<compile_context>
chip_gen: v7x
topology: tpu7x:2x2x1
jax: 0.10.0
libtpu: 0.0.40
codegen_flags: <defaults>
</compile_context>

<pallas_src>
import jax
import jax.numpy as jnp
from jax import lax
from jax.experimental import pallas as pl
from jax.experimental.pallas import tpu as pltpu


def _round_up(x, m):
    return ((x + m - 1) // m) * m


def square_items_kernel(x_ref, w_ref, b_ref, o_ref, acc_ref):
    # Zero the f32 accumulator at the start of the K reduction.
    @pl.when(pl.program_id(2) == 0)
    def _():
        acc_ref[...] = jnp.zeros_like(acc_ref)

    # Contract x (TM, TK) against W (TN, TK) over K directly from the
    # (out_features, in_features) layout; no in-kernel weight transpose.
    acc_ref[...] += lax.dot_general(
        x_ref[...],
        w_ref[...],
        dimension_numbers=(((1,), (1,)), ((), ())),
        preferred_element_type=jnp.float32,
    )

    # Finalize: apply the x*2 scale once per output tile (bit-exact since 2.0
    # is a power of two), add bias, write the output tile.
    @pl.when(pl.program_id(2) == pl.num_programs(2) - 1)
    def _():
        o_ref[...] = (acc_ref[...] * 2.0 + b_ref[...]).astype(o_ref.dtype)


def _pick_m_tile(m):
    if m <= 8:
        return m                       # single block equal to the full dim
    return min((m // 8) * 8, 512)      # multiple of 8, never exceeds m


def _pick_n_tile(n):
    if n <= 128:
        return n                       # single block equal to the full dim
    return min((n // 128) * 128, 512)  # multiple of 128, never exceeds n


def _pick_k_tile(k_pad):
    # Largest multiple of 128 that divides k_pad, capped at 1024: avoids
    # wasteful K zero-padding while amortizing per-grid-step overhead.
    for cand in range(1024, 0, -128):
        if k_pad % cand == 0:
            return cand
    return 128


def square_items_forward(x, weight, bias, *, force_pallas=False):
    """out = (x * 2) @ weight.T + bias  (PyTorch nn.Linear semantics)."""
    orig_shape = x.shape
    K = orig_shape[-1]
    N = weight.shape[0]
    x2d = x.reshape(-1, K)
    M = x2d.shape[0]

    # Small-problem fallback: XLA's fused GEMM beats a single-grid-step
    # pallas_call plus the K-pad op at tiny sizes.
    if not force_pallas and M * N * K < (256 * 256 * 256):
        out = (x2d * 2.0) @ weight.T + bias
        return out.reshape(*orig_shape[:-1], N)

    # --- Tile selection (VMEM-safe on v5e/v6e/v7x) -----------------------
    TM = _pick_m_tile(M)
    TN = _pick_n_tile(N)
    K_pad = _round_up(K, 128)
    TK = _pick_k_tile(K_pad)

    # Megacore: make sure at least one "parallel" grid axis has >= 2 blocks.
    if pl.cdiv(M, TM) == 1 and pl.cdiv(N, TN) == 1:
        if TN > 128:
            TN = _round_up(pl.cdiv(N, 2), 128)
        elif M >= 16:
            TM = _round_up(pl.cdiv(M, 2), 8)

    grid_m = pl.cdiv(M, TM)
    grid_n = pl.cdiv(N, TN)
    grid_k = K_pad // TK
    grid = (grid_m, grid_n, grid_k)

    # Only the K (reduction) axis needs zero padding for correctness; partial
    # M/N blocks are clipped by Pallas on read/write.
    x_p = jnp.pad(x2d, ((0, 0), (0, K_pad - K))) if K_pad != K else x2d
    w_p = jnp.pad(weight, ((0, 0), (0, K_pad - K))) if K_pad != K else weight
    b_p = bias.reshape(1, N)

    itemsize = x_p.dtype.itemsize
    flops = 2 * M * K_pad * N + M * N
    bytes_accessed = (
        x_p.size * itemsize * grid_n       # x re-streamed once per N block-column
        + w_p.size * itemsize * grid_m     # W re-streamed once per M block-row
        + b_p.size * itemsize * grid_m
        + M * N * itemsize                 # output writeback
    )

    out = pl.pallas_call(
        square_items_kernel,
        out_shape=jax.ShapeDtypeStruct((M, N), x.dtype),
        grid_spec=pltpu.PrefetchScalarGridSpec(
            num_scalar_prefetch=0,
            grid=grid,
            in_specs=[
                pl.BlockSpec((TM, TK), lambda i, j, k: (i, k)),  # x tile
                pl.BlockSpec((TN, TK), lambda i, j, k: (j, k)),  # W tile (out, in)
                pl.BlockSpec((1, TN), lambda i, j, k: (0, j)),   # bias tile
            ],
            out_specs=pl.BlockSpec((TM, TN), lambda i, j, k: (i, j)),
            scratch_shapes=[pltpu.VMEM((TM, TN), jnp.float32)],
        ),
        compiler_params=pltpu.CompilerParams(
            dimension_semantics=("parallel", "parallel", "arbitrary"),
            vmem_limit_bytes=32 * 1024 * 1024,
        ),
        cost_estimate=pl.CostEstimate(
            flops=flops, transcendentals=0, bytes_accessed=bytes_accessed
        ),
    )(x_p, w_p, b_p)

    return out.reshape(*orig_shape[:-1], N)


if __name__ == "__main__":
    key = jax.random.PRNGKey(0)
    k_x, k_w, k_b, k_x2, k_w2, k_b2 = jax.random.split(key, 6)

    # ---- Small demo shape consistent with the module (batch=2, seq=8,
    # in_features=32, out_features=16): exercises the fused-JAX fallback.
    batch, seq, in_f, out_f = 2, 8, 32, 16
    bound = 1.0 / (in_f ** 0.5)
    x = jax.random.normal(k_x, (batch, seq, in_f), dtype=jnp.float32)
    w = jax.random.uniform(k_w, (out_f, in_f), minval=-bound, maxval=bound,
                           dtype=jnp.float32)
    b = jax.random.uniform(k_b, (out_f,), minval=-bound, maxval=bound,
                           dtype=jnp.float32)
    out_small = jax.block_until_ready(square_items_forward(x, w, b))
    ref_small = (x * 2.0) @ w.T + b
    assert out_small.shape == (batch, seq, out_f)
    assert jnp.allclose(out_small, ref_small, atol=1e-5, rtol=1e-5)

    # ---- Larger shape that exercises the Pallas path: multi-step K reduction,
    # partial N output block, 2 parallel N blocks (megacore on v7x).
    batch2, seq2, in_f2, out_f2 = 5, 32, 1280, 192
    bound2 = 1.0 / (in_f2 ** 0.5)
    x2 = jax.random.normal(k_x2, (batch2, seq2, in_f2), dtype=jnp.float32)
    w2 = jax.random.uniform(k_w2, (out_f2, in_f2), minval=-bound2, maxval=bound2,
                            dtype=jnp.float32)
    b2 = jax.random.uniform(k_b2, (out_f2,), minval=-0.5, maxval=0.5,
                            dtype=jnp.float32)
    out_big = jax.block_until_ready(
        square_items_forward(x2, w2, b2, force_pallas=True))
    ref_big = 2.0 * jnp.matmul(x2, w2.T, precision=lax.Precision.HIGHEST) + b2
    assert out_big.shape == (batch2, seq2, out_f2)
    assert jnp.allclose(out_big, ref_big, atol=2e-2, rtol=1e-2), (
        float(jnp.max(jnp.abs(out_big - ref_big))))

    print("KERNEL_OK")
</pallas_src>

<mosaic_0001>
module attributes {stable_mosaic.version = 11 : i64} {
  func.func @square_items_kernel(%arg0: i32, %arg1: i32, %arg2: i32, %arg3: memref<160x640xf32, #tpu.memory_space<vmem>>, %arg4: memref<128x640xf32, #tpu.memory_space<vmem>>, %arg5: memref<1x128xf32, #tpu.memory_space<vmem>>, %arg6: memref<160x128xf32, #tpu.memory_space<vmem>>, %arg7: memref<160x128xf32, #tpu.memory_space<vmem>>) attributes {dimension_semantics = [#tpu.dimension_semantics<parallel>, #tpu.dimension_semantics<parallel>, #tpu.dimension_semantics<arbitrary>], iteration_bounds = array<i64: 1, 2, 2>, scalar_prefetch = 0 : i64, scratch_operands = 1 : i64, tpu.core_type = #tpu.core_type<tc>, window_params = [{transform_indices = @transform_0, window_bounds = array<i64: 160, 640>}, {transform_indices = @transform_1, window_bounds = array<i64: 128, 640>}, {transform_indices = @transform_2, window_bounds = array<i64: 1, 128>}, {transform_indices = @transform_3, window_bounds = array<i64: 160, 128>}]} {
    %c0_i32 = arith.constant 0 : i32
    %0 = arith.cmpi eq, %arg2, %c0_i32 : i32
    %1 = arith.extui %0 : i1 to i32
    %c0_i32_0 = arith.constant 0 : i32
    %2 = arith.cmpi ne, %1, %c0_i32_0 : i32
    scf.if %2 {
      %cst_9 = arith.constant 0.000000e+00 : f32
      %12 = vector.broadcast %cst_9 : f32 to vector<160x128xf32>
      %c0_10 = arith.constant 0 : index
      %c0_11 = arith.constant 0 : index
      %13 = vector.load %arg7[%c0_10, %c0_11] : memref<160x128xf32, #tpu.memory_space<vmem>>, vector<160x128xf32>
      tpu.vector_store %arg7[%c0_10, %c0_11], %12 {strides = array<i32>} : memref<160x128xf32, #tpu.memory_space<vmem>>, vector<160x128xf32>,
    } else {
    }
    %c0 = arith.constant 0 : index
    %c0_1 = arith.constant 0 : index
    %3 = vector.load %arg7[%c0, %c0_1] : memref<160x128xf32, #tpu.memory_space<vmem>>, vector<160x128xf32>
    %c0_2 = arith.constant 0 : index
    %c0_3 = arith.constant 0 : index
    %4 = vector.load %arg3[%c0_2, %c0_3] : memref<160x640xf32, #tpu.memory_space<vmem>>, vector<160x640xf32>
    %c0_4 = arith.constant 0 : index
    %c0_5 = arith.constant 0 : index
    %5 = vector.load %arg4[%c0_4, %c0_5] : memref<128x640xf32, #tpu.memory_space<vmem>>, vector<128x640xf32>
    %cst = arith.constant dense<0.000000e+00> : vector<160x128xf32>
    %6 = tpu.matmul %4, %5, %cst {dimension_numbers = #tpu.dot_dimension_numbers<[1], [1], [0], [0], [0, 0, 1, 0], [], []>} : vector<160x640xf32>, vector<128x640xf32>, vector<160x128xf32> -> vector<160x128xf32>
    %7 = arith.addf %3, %6 : vector<160x128xf32>
    %c0_6 = arith.constant 0 : index
    %c0_7 = arith.constant 0 : index
    %8 = vector.load %arg7[%c0_6, %c0_7] : memref<160x128xf32, #tpu.memory_space<vmem>>, vector<160x128xf32>
    tpu.vector_store %arg7[%c0_6, %c0_7], %7 {strides = array<i32>} : memref<160x128xf32, #tpu.memory_space<vmem>>, vector<160x128xf32>,
    %c1_i32 = arith.constant 1 : i32
    %9 = arith.cmpi eq, %arg2, %c1_i32 : i32
    %10 = arith.extui %9 : i1 to i32
    %c0_i32_8 = arith.constant 0 : i32
    %11 = arith.cmpi ne, %10, %c0_i32_8 : i32
    scf.if %11 {
      %c0_9 = arith.constant 0 : index
      %c0_10 = arith.constant 0 : index
      %12 = vector.load %arg7[%c0_9, %c0_10] : memref<160x128xf32, #tpu.memory_space<vmem>>, vector<160x128xf32>
      %cst_11 = arith.constant 2.000000e+00 : f32
      %13 = vector.broadcast %cst_11 : f32 to vector<160x128xf32>
      %14 = arith.mulf %12, %13 : vector<160x128xf32>
      %c0_12 = arith.constant 0 : index
      %c0_13 = arith.constant 0 : index
      %15 = vector.load %arg5[%c0_12, %c0_13] : memref<1x128xf32, #tpu.memory_space<vmem>>, vector<1x128xf32>
      %16 = vector.broadcast %15 : vector<1x128xf32> to vector<160x128xf32>
      %17 = arith.addf %14, %16 : vector<160x128xf32>
      %c0_14 = arith.constant 0 : index
      %c0_15 = arith.constant 0 : index
      %18 = vector.load %arg6[%c0_14, %c0_15] : memref<160x128xf32, #tpu.memory_space<vmem>>, vector<160x128xf32>
      tpu.vector_store %arg6[%c0_14, %c0_15], %17 {strides = array<i32>} : memref<160x128xf32, #tpu.memory_space<vmem>>, vector<160x128xf32>,
    } else {
    }
    return
  }
  func.func @transform_0(%arg0: i32, %arg1: i32, %arg2: i32) -> (i32, i32) {
    %c0_i32 = arith.constant 0 : i32
    return %arg0, %arg2 : i32, i32
  }
  func.func @transform_1(%arg0: i32, %arg1: i32, %arg2: i32) -> (i32, i32) {
    %c0_i32 = arith.constant 0 : i32
    return %arg1, %arg2 : i32, i32
  }
  func.func @transform_2(%arg0: i32, %arg1: i32, %arg2: i32) -> (i32, i32) {
    %c0_i32 = arith.constant 0 : i32
    %c0_i32_0 = arith.constant 0 : i32
    return %c0_i32, %arg1 : i32, i32
  }
  func.func @transform_3(%arg0: i32, %arg1: i32, %arg2: i32) -> (i32, i32) {
    %c0_i32 = arith.constant 0 : i32
    return %arg0, %arg1 : i32, i32
  }
}

</mosaic_0001>

<bundles_post_ra>
// kernel: tpu_custom_call.1
= control target key start
LH: loop header
LB: loop body
LE: loop exit
PB: predicated region body
PF: predicated region fallthrough
CT: control target
= control target key end

     0   :  { %s2603_s0 = inlined_call_operand.hbm [shape: f32[160,1280], index: 0, kind: input, shape index: {}]   ;;  %s2604_s1 = inlined_call_operand.hbm [shape: f32[192,1280], index: 1, kind: input, shape index: {}]   ;;  %s2605_s2 = inlined_call_operand.vmem [shape: f32[1,192], index: 2, kind: input, shape index: {}]   ;;  %s2606_s3 = inlined_call_operand.hbm [shape: f32[160,192], index: 3, kind: output, shape index: {}]  }
   0x1   :  { %2617 = sst [smem:[#allocation21_spill]] %s2603_s0 }
   0x2   :  { %8 = vsyncpa [#allocation4], 0 }
   0x3   :  { %10 = vsyncpa [#allocation4 + $0x1], 0 }
   0x4   :  { %11 = vsyncpa [#allocation7], 0 }
   0x5   :  { %13 = vsyncpa [#allocation7 + $0x1], 0 }
   0x6   :  { %14 = vsyncpa [#allocation5], 0 }
   0x7   :  { %16 = vsyncpa [#allocation5 + $0x1], 0  ;;  %s1917_s12 = smov 0   ;;  %s1919_s13 = smov 0  }
   0x8   :  { %s1921_s14 = smov 0   ;;  %s1923_s15 = smov 0  }
   0x9   :  { %s1925_s16 = smov 0   ;;  %s1927_s17 = smov 0  }
   0xa   :  { %s1929_s18 = smov 0   ;;  %s1931_s19 = smov 0  }
   0xb   :  { %s1933_s20 = smov 0   ;;  %s1935_s21 = smov 0  }
   0xc   :  { %s1937_s22 = smov 0   ;;  %s1939_s23 = smov 0  }
   0xd   :  { %s1941_s24 = smov 0   ;;  %s1943_s25 = smov 0  }
   0xe LB: > { %2618 = sst [smem:[#allocation12_spill]] %s1830_s12  ;;  %s2607_s26 = sadd.s32 4294967295, %s1882_s25   ;;  %s1882_s25 = sphi %s1943_s25, %s22_s25   ;;  %s1878_s24 = sphi %s1941_s24, %s2662_s24   ;;  %s1874_s23 = sphi %s1939_s23, %s2661_s23   ;;  %s1870_s22 = sphi %s1937_s22, %s2660_s22   ;;  %s1866_s21 = sphi %s1935_s21, %s2659_s21   ;;  %s1862_s20 = sphi %s1933_s20, %s2648_s20   ;;  %s1858_s19 = sphi %s1931_s19, %s2658_s19   ;;  %s1854_s18 = sphi %s1929_s18, %s2657_s18   ;;  %s1850_s17 = sphi %s1927_s17, %s2656_s17   ;;  %s1846_s16 = sphi %s1925_s16, %s2655_s16   ;;  %s1842_s15 = sphi %s1923_s15, %s2654_s15   ;;  %s1838_s14 = sphi %s1921_s14, %s2645_s14   ;;  %s1834_s13 = sphi %s1919_s13, %s2653_s13   ;;  %s1830_s12 = sphi %s1917_s12, %s2652_s12  }
   0xf   : > { %2619 = sst [smem:[#allocation13_spill]] %s1838_s14  ;;  %s34_s28 = sadd.s32 1, %s1874_s23 }
  0x10   : > { %2620 = sst [smem:[#allocation14_spill]] %s1862_s20  ;;  %s37_s29 = sadd.s32 1, %s1878_s24 }
  0x11   : > { %p35_p0 = scmp.ge.s32.totalorder %s34_s28, 2  ;;  %s50_s30 = sadd.s32 1, %s1862_s20 }
  0x12   : > { %p57_p1 = scmp.ne.s32.totalorder %s1862_s20, %s1858_s19  ;;  %p58_p2 = scmp.eq.s32.totalorder %s1882_s25, 0 }
  0x13   : > { %s2664_s28 = smov (%p35_p0, %s34_s28), 0  ;;  %s2666_s29 = smov (!%p35_p0, %s37_s29), %s1878_s24 }
  0x14   : > { %2621 = sst [smem:[#allocation15_spill]] %s2664_s28  ;;  %s46_s4 = ssub.s32 %s1874_s23, %s2664_s28 }
  0x15   : > { %p2000_p3 = por %p58_p2, %p57_p1  ;;  %p39_p4 = scmp.ge.s32.totalorder %s2666_s29, 2 }
  0x16   : > { %p48_p5 = scmp.eq.s32.totalorder %s46_s4, 0  ;;  %p63_p6 = scmp.ne.s32.totalorder %s1858_s19, %s1854_s18 }
  0x17   : > { %p2007_p7 = scmp.eq.s32.totalorder %s2607_s26, 0  ;;  %s2668_s29 = smov (%p39_p4, %s2666_s29), 0 }
  0x18   : > { %2624 = sst [smem:[#allocation16_spill]] %s2668_s29  ;;  %s73_s9 = ssub.s32 %s1878_s24, %s2668_s29 }
  0x19   : > { %s2014_s7 = scalar_select %p48_p5, %s1862_s20, %s50_s30  }
  0x1a   : > { %p2018_p8 = por %p2007_p7, %p63_p6  ;;  %s75_s10 = sor.u32 %s73_s9, %s46_s4 }
  0x1b   : > { %2625 = sst [smem:[#allocation17_spill]] %s2014_s7  ;;  %s78_s11 = sadd.s32 1, %s1850_s17 }
  0x1c   : > { %s2626_s8 = scalar_select %p2018_p8, 1, 0 }
  0x1d   : > { %p76_p9 = scmp.eq.s32.totalorder %s75_s10, 0  ;;  %p85_p10 = scmp.ne.s32.totalorder %s1850_s17, %s1846_s16 }
  0x1e   : > { %p91_p11 = scmp.ne.s32.totalorder %s1846_s16, %s1842_s15  ;;  %p130_p12 = scmp.eq.s32.totalorder %s73_s9, 0 }
  0x1f   : > { %s2030_s18 = scalar_select %p76_p9, %s1850_s17, %s78_s11  }
  0x20   : > { %p2034_p13 = por %p85_p10, %p58_p2  ;;  %p2040_p0 = por %p91_p11, %p2007_p7 }
  0x21   : > { %2627 = sst [smem:[#allocation18_spill]] %s2030_s18  ;;  %s132_s26 = sadd.s32 1, %s1838_s14 }
  0x22   : > { %s2629_s27 = scalar_select %p2040_p0, 1, 0 }
  0x23   : > { %p142_p1 = scmp.ne.s32.totalorder %s1838_s14, %s1834_s13  ;;  %s2631_s10 = sadd.s32 4294967295, %s1882_s25  }
  0x24   : > { %s2048_s4 = scalar_select %p130_p12, %s1838_s14, %s132_s26  }
  0x25   : > { %p143_p4 = scmp.eq.s32.totalorder %s2631_s10, 3  ;;  %p148_p5 = scmp.ne.s32.totalorder %s1834_s13, %s1830_s12 }
  0x26   : > { %2630 = sst [smem:[#allocation19_spill]] %s2048_s4  ;;  %s2632_s15 = sadd.s32 4294967294, %s1882_s25  }
  0x27   : > { %p149_p6 = scmp.eq.s32.totalorder %s2632_s15, 3  ;;  %p2056_p9 = por %p143_p4, %p142_p1 }
  0x28   : > { %p1287_p7 = scmp.ge.s32.totalorder %s1882_s25, 4 }
  0x29   : > { %s2633_s9 = scalar_select %p2056_p9, 1, 0 }
  0x2a   : > { %p2060_p2 = por %p149_p6, %p148_p5  ;;  %165 = sbr.rel (%p1287_p7) target bundleno = 112 (0x70), region = 16 }
  0x2b   : > { %s169_s26 = sand.u32 (!%p1287_p7), 1, %s1862_s20   ;;  %s1303_s6 = smul.u32 (!%p1287_p7), 640, %s1874_s23 }
  0x2c   : > { %s2634_s11 = scalar_select %p2060_p2, 1, 0 }
  0x2d   : > { %s1538_s10 = smul.u32 (!%p1287_p7), 800, %s169_s26  ;;  %s2636_s0 = sld [smem:[#allocation21_spill]] (!%p1287_p7) }
  0x2e   : > { %2635 = sst [smem:[#allocation20_spill]] %s2634_s11  ;;  %s2074_s4 = scalar_lea.sflag (!%p1287_p7), [#allocation4], %s169_s26 }
  0x2f   : > { %s173_s7 = scalar_lea.vmem (!%p1287_p7), [#allocation3], %s1538_s10 }
  0x30   : > { %s183_s18 = sshll.u32 (!%p1287_p7), %s173_s7, 4  ;;  %s2072_s18 = int_to_ptr.vmem [resolvable:$true] %s183_s18 }
  0x33   : > { %s2070_s15 = scalar_lea.hbm %s2636_s0, %s1303_s6  ;;  %s1680_s28 = scalar_lea.hbm %s2636_s0, 25600 }
  0x34   : > { %s1676_s14 = scalar_lea.hbm %s2070_s15, 12800  ;;  %p1681_p1 = scmp.lt.u32.totalorder %s2070_s15, %s2636_s0 }
  0x35   : > { %p1677_p10 = scmp.ne.s32.totalorder %s2070_s15, %s1676_s14  ;;  %p1682_p4 = scmp.lt.u32.totalorder %s1680_s28, %s1676_s14 }
  0x36   : > { %p1684_p6 = scmp.lt.u32.totalorder %s1676_s14, %s2070_s15 }
  0x37   : > { %p1678_p11 = pnand %p1677_p10, %p2000_p3  ;;  %p1683_p5 = por %p1682_p4, %p1681_p1 }
  0x39   : > { %p1679_p12 = pneg %p1678_p11  ;;  %p1685_p7 = por %p1684_p6, %p1683_p5 }
  0x3b   : > { %p1686_p2 = pnand %p1685_p7, %p1679_p12 }
  0x3d   : > { %1689 = shalt.err (!%p1686_p2)
}
  0x3e   : > { %s1690_s7 = scalar_lea.vmem %s2072_s18, 12800  ;;  %s1884_s20 = smov [#allocation3]  }
  0x3f   : > { %p1691_p10 = scmp.ne.s32.totalorder %s2072_s18, %s1690_s7  ;;  %s1694_s11 = sshll.u32 %s1884_s20, 4  ;;  %s1695_s11 = int_to_ptr.vmem [resolvable:$false] %s1694_s11 }
  0x40   : > { %s1696_s26 = scalar_lea.vmem %s1695_s11, 25600  ;;  %p1697_p0 = scmp.lt.s32.totalorder %s2072_s18, %s1695_s11 }
  0x41   : > { %p1692_p11 = pnand %p1691_p10, %p2000_p3  ;;  %p1698_p8 = scmp.lt.s32.totalorder %s1696_s26, %s1690_s7 }
  0x43   : > { %p1693_p9 = pneg %p1692_p11  ;;  %p1699_p1 = por %p1698_p8, %p1697_p0 }
  0x45   : > { %p1700_p4 = pnand %p1699_p1, %p1693_p9 }
  0x47   : > { %1703 = shalt.err (!%p1700_p4)
}
  0x48   : > { %s1885_s14 = smov 1280   ;;  %s1886_s10 = smov 640  }
  0x49   : > { %s1887_s28 = smov 40   ;;  %192 = sbr.rel (!%p2034_p13) target bundleno = 112 (0x70), region = 24 }
  0x4a   : > { %1544 = dma.hbm_to_vmem [thread:$0]  (%p2000_p3), %s2070_s15, 12800, %s2072_s18, %s2074_s4, %s1885_s14, %s1886_s10, %s1887_s28  }
  0x4b   : > { %s193_s29 = sand.u32 (%p2034_p13), 1, %s1850_s17   ;;  %s1289_s6 = sshll.u32 (%p2034_p13), %s1878_s24, 4 }
  0x4c   : > { %s1539_s7 = smul.u32 (%p2034_p13), 640, %s193_s29  ;;  %s200_s11 = ssub.s32 (%p2034_p13), 24, %s1289_s6 }
  0x4d   : > { %s199_s20 = smul.u32 (%p2034_p13), 5, %s1874_s23  ;;  %p201_p8 = scmp.lt.s32.totalorder (%p2034_p13), %s200_s11, 16 }
  0x4e   : > { %s2106_s12 = scalar_lea.sflag (%p2034_p13), [#allocation7], %s193_s29  ;;  %s197_s5 = scalar_lea.vmem (%p2034_p13), [#allocation6], %s1539_s7 }
  0x50   : > { %s2670_s11 = smov (!%p201_p8, %s200_s11), 16 }
  0x51   : > { %s2103_s26 = smul.u32 640, %s2670_s11 }
  0x53   : > { %s206_s0 = ssub.s32 10240, %s2103_s26 }
  0x54   : > { %207 = vsyncadd %s2106_s12, %s206_s0  ;;  %p1292_p3 = scmp.ne.s32.totalorder %s2103_s26, 0  ;;  %s1540_s18 = smul.u32 160, %s1878_s24 }
  0x55   : > { %s214_s30 = sshll.u32 %s197_s5, 4  ;;  %s1708_s7 = scalar_lea.hbm %s2604_s1, 30720  ;;  %s2111_s30 = int_to_ptr.vmem [resolvable:$true] %s214_s30 }
  0x56   : > { %s210_s4 = sadd.s32 %s1540_s18, %s199_s20 }
  0x57   : > { %s1294_s15 = sshll.u32 %s210_s4, 7 }
  0x58   : > { %s2116_s28 = scalar_lea.hbm %s2604_s1, %s1294_s15 }
  0x59   : > { %s1704_s0 = scalar_lea.hbm %s2116_s28, %s2103_s26  ;;  %p1709_p2 = scmp.lt.u32.totalorder %s2116_s28, %s2604_s1 }
  0x5a   : > { %p1705_p13 = scmp.ne.s32.totalorder %s2116_s28, %s1704_s0  ;;  %p1710_p12 = scmp.lt.u32.totalorder %s1708_s7, %s1704_s0 }
  0x5b   : > { %p1712_p6 = scmp.lt.u32.totalorder %s1704_s0, %s2116_s28 }
  0x5c   : > { %p1706_p0 = pnand %p1705_p13, %p1292_p3  ;;  %p1711_p5 = por %p1710_p12, %p1709_p2 }
  0x5e   : > { %p1707_p9 = pneg %p1706_p0  ;;  %p1713_p7 = por %p1712_p6, %p1711_p5 }
  0x60   : > { %p1714_p10 = pnand %p1713_p7, %p1707_p9 }
  0x62   : > { %1717 = shalt.err (!%p1714_p10)
}
  0x63   : > { %s1718_s5 = scalar_lea.vmem %s2111_s30, %s2103_s26  ;;  %s1888_s18 = smov [#allocation6]  }
  0x64   : > { %p1719_p11 = scmp.ne.s32.totalorder %s2111_s30, %s1718_s5  ;;  %s1722_s4 = sshll.u32 %s1888_s18, 4  ;;  %s1723_s4 = int_to_ptr.vmem [resolvable:$false] %s1722_s4 }
  0x65   : > { %s1724_s15 = scalar_lea.vmem %s1723_s4, 20480  ;;  %p1725_p8 = scmp.lt.s32.totalorder %s2111_s30, %s1723_s4 }
  0x66   : > { %p1720_p1 = pnand %p1719_p11, %p1292_p3  ;;  %p1726_p13 = scmp.lt.s32.totalorder %s1724_s15, %s1718_s5 }
  0x68   : > { %p1721_p4 = pneg %p1720_p1  ;;  %p1727_p0 = por %p1726_p13, %p1725_p8 }
  0x6a   : > { %p1728_p2 = pnand %p1727_p0, %p1721_p4 }
  0x6c   : > { %1731 = shalt.err (!%p1728_p2)
}
  0x6d   : > { %s1889_s14 = smov 1280   ;;  %s1890_s10 = smov 640  }
  0x6e   : > { %s1891_s0 = smov 40  }
  0x6f   : > { %220 = dma.hbm_to_vmem [thread:$0]  (%p1292_p3), %s2116_s28, %s2103_s26, %s2111_s30, %s2106_s12, %s1889_s14, %s1890_s10, %s1891_s0  }
  0x70 PF: > { %p1296_p9 = scmp.ge.s32.totalorder %s1882_s25, 1  ;;  %p228_p12 = scmp.lt.s32.totalorder %s1882_s25, 5 }
  0x72   : > { %p229_p5 = pnand %p1296_p9, %p228_p12 }
  0x73   : > { %s234_s29 = sand.u32 (!%p229_p5), 1, %s1858_s19   ;;  %p2637_p6 = scmp.ne.s32.totalorder (!%p229_p5), %s2626_s8, 0 }
  0x74   : > { %232 = sbr.rel (%p229_p5) target bundleno = 569 (0x239), region = 32  ;;  %s235_s7 = scalar_lea.sflag (!%p229_p5), [#allocation4], %s234_s29 }
  0x75   : > { %s1541_s6 = smul.u32 (!%p229_p5), 800, %s234_s29 }
  0x77   : > { %s2146_s20 = scalar_lea.vmem (!%p229_p5), [#allocation3], %s1541_s6 }
  0x7b   : > { %1817 = dma.done.wait (%p2637_p6), %s235_s7, 12800  }
  0x7c   : > { %1819 = vsyncadd (%p2637_p6), %s235_s7, 4294954496  ;;  %s243_s12 = sand.u32 1, %s1846_s16   ;;  %p2638_p3 = scmp.ne.s32.totalorder %s2629_s27, 0 }
  0x7d   : > { %s1542_s26 = smul.u32 640, %s243_s12  ;;  %s244_s30 = scalar_lea.sflag [#allocation7], %s243_s12 }
  0x7f   : > { %s2153_s28 = scalar_lea.vmem [#allocation6], %s1542_s26 }
  0x80   : > { %1821 = dma.done.wait (%p2638_p3), %s244_s30, 10240  }
  0x81   : > { %1823 = vsyncadd (%p2638_p3), %s244_s30, 4294957056  ;;  %s275_s11 = sand.u32 1, %s1834_s13   ;;  %p287_p7 = scmp.lt.s32.totalorder %s1870_s22, 1 }
  0x82   : > { %s1543_s8 = smul.u32 160, %s275_s11  ;;  %p1297_p10 = scmp.ne.s32.totalorder %s1866_s21, 0 }
  0x83   : > { %s2164_s5 = scalar_select %p287_p7, %s1870_s22, 1 }
  0x84   : > { %s2170_s14 = scalar_lea.vmem [#allocation8], %s1543_s8  ;;  %294 = sbr.rel (%p1297_p10) target bundleno = 143 (0x8f), region = 44  ;;  %v1892_v0 = vmov (!%p1297_p10), 0.0  }
  0x85   : > { %s289_s15 = scalar_lea.vmem %s2605_s2, %s2164_s5  ;;  %295 = vst [vmem:[#allocation2] sm:$0xff] (!%p1297_p10), %v1892_v0  ;;  %296 = vst [vmem:[#allocation2 + $0x8] sm:$0xff] (!%p1297_p10), %v1892_v0 }
  0x86   : > { %297 = vst [vmem:[#allocation2 + $0x10] sm:$0xff] (!%p1297_p10), %v1892_v0  ;;  %298 = vst [vmem:[#allocation2 + $0x18] sm:$0xff] (!%p1297_p10), %v1892_v0 }
  0x87   : > { %299 = vst [vmem:[#allocation2 + $0x20] sm:$0xff] (!%p1297_p10), %v1892_v0  ;;  %300 = vst [vmem:[#allocation2 + $0x28] sm:$0xff] (!%p1297_p10), %v1892_v0 }
  0x88   : > { %301 = vst [vmem:[#allocation2 + $0x30] sm:$0xff] (!%p1297_p10), %v1892_v0  ;;  %302 = vst [vmem:[#allocation2 + $0x38] sm:$0xff] (!%p1297_p10), %v1892_v0 }
  0x89   : > { %303 = vst [vmem:[#allocation2 + $0x40] sm:$0xff] (!%p1297_p10), %v1892_v0  ;;  %304 = vst [vmem:[#allocation2 + $0x48] sm:$0xff] (!%p1297_p10), %v1892_v0 }
  0x8a   : > { %305 = vst [vmem:[#allocation2 + $0x50] sm:$0xff] (!%p1297_p10), %v1892_v0  ;;  %306 = vst [vmem:[#allocation2 + $0x58] sm:$0xff] (!%p1297_p10), %v1892_v0 }
  0x8b   : > { %307 = vst [vmem:[#allocation2 + $0x60] sm:$0xff] %v1892_v0  ;;  %308 = vst [vmem:[#allocation2 + $0x68] sm:$0xff] %v1892_v0 }
  0x8c   : > { %309 = vst [vmem:[#allocation2 + $0x70] sm:$0xff] %v1892_v0  ;;  %310 = vst [vmem:[#allocation2 + $0x78] sm:$0xff] %v1892_v0 }
  0x8d   : > { %311 = vst [vmem:[#allocation2 + $0x80] sm:$0xff] %v1892_v0  ;;  %312 = vst [vmem:[#allocation2 + $0x88] sm:$0xff] %v1892_v0 }
  0x8e   : > { %313 = vst [vmem:[#allocation2 + $0x90] sm:$0xff] %v1892_v0  ;;  %314 = vst [vmem:[#allocation2 + $0x98] sm:$0xff] %v1892_v0 }
  0x8f PF: > { %v436_v1 = vld [vmem:[%s2153_s28 + $0x8] sm:$0xff]  ;;  %v441_v2 = vld [vmem:[%s2153_s28 + $0x30] sm:$0xff]  ;;  %v438_v3 = vld [vmem:[%s2153_s28 + $0x18] sm:$0xff]  ;;  %p1298_p11 = scmp.ne.s32.totalorder %s1866_s21, 1 }
  0x90   : > { %v1402_v4 = vpack.c.bf16 %v441_v2, %v436_v1  ;;  %v443_v5 = vld [vmem:[%s2153_s28 + $0x40] sm:$0xff]  ;;  %v440_v7 = vld [vmem:[%s2153_s28 + $0x28] sm:$0xff]  ;;  %v437_v10 = vld [vmem:[%s2153_s28 + $0x10] sm:$0xff] }
  0x91   : > { %v435_v6 = vld [vmem:[%s2153_s28] sm:$0xff]  ;;  %v2179_v8 = vpack.c.bf16 %v443_v5, %v438_v3  ;;  %v442_v11 = vld [vmem:[%s2153_s28 + $0x38] sm:$0xff]  ;;  %v448_v15 = vld [vmem:[%s2153_s28 + $0x68] sm:$0xff] }
  0x92   : > { %v1404_v9 = vpack.c.bf16 %v440_v7, %v435_v6  ;;  %v446_v12 = vld [vmem:[%s2153_s28 + $0x58] sm:$0xff]  ;;  %1403 = vmatprep.subr.bf16.mxu0 %v1402_v4  ;;  %v2184_v13 = vpack.c.bf16 %v442_v11, %v437_v10  ;;  %v451_v14 = vld [vmem:[%s2153_s28 + $0x80] sm:$0xff]  ;;  %v453_v16 = vld [vmem:[%s2153_s28 + $0x90] sm:$0xff] }
  0x93   : > { %1498 = vmatprep.subr.bf16.mxu1 %v2179_v8  ;;  %v1406_v17 = vpack.c.bf16 %v451_v14, %v446_v12  ;;  %v2190_v18 = vpack.c.bf16 %v453_v16, %v448_v15  ;;  %v445_v19 = vld [vmem:[%s2153_s28 + $0x50] sm:$0xff]  ;;  %v450_v20 = vld [vmem:[%s2153_s28 + $0x78] sm:$0xff]  ;;  %v447_v21 = vld [vmem:[%s2153_s28 + $0x60] sm:$0xff] }
  0x94   : > { %1405 = vmatpush1.bf16.xpose.msra.mxu0 %v1404_v9  ;;  %1506 = vmatpush1.bf16.xpose.msra.mxu1 %v2184_v13  ;;  %v452_v22 = vld [vmem:[%s2153_s28 + $0x88] sm:$0xff]  ;;  %v461_v24 = vld [vmem:[%s2153_s28 + $0xd0] sm:$0xff]  ;;  %v458_v25 = vld [vmem:[%s2153_s28 + $0xb8] sm:$0xff]  ;;  %v1408_v27 = vpack.c.bf16 %v450_v20, %v445_v19 }
  0x95   : > { %1407 = vmatprep.subr.bf16.mxu0 %v1406_v17  ;;  %1499 = vmatprep.subr.bf16.mxu1 %v2190_v18  ;;  %v456_v23 = vld [vmem:[%s2153_s28 + $0xa8] sm:$0xff]  ;;  %v463_v26 = vld [vmem:[%s2153_s28 + $0xe0] sm:$0xff]  ;;  %v2202_v28 = vpack.c.bf16 %v452_v22, %v447_v21  ;;  %v457_v33 = vld [vmem:[%s2153_s28 + $0xb0] sm:$0xff] }
  0x96   : > { %v1410_v29 = vpack.c.bf16 %v461_v24, %v456_v23  ;;  %v2204_v30 = vpack.c.bf16 %v463_v26, %v458_v25  ;;  %v455_v31 = vld [vmem:[%s2153_s28 + $0xa0] sm:$0xff]  ;;  %v460_v32 = vld [vmem:[%s2153_s28 + $0xc8] sm:$0xff]  ;;  %v462_v34 = vld [vmem:[%s2153_s28 + $0xd8] sm:$0xff] }
  0x97   : > { %v466_v35 = vld [vmem:[%s2153_s28 + $0xf8] sm:$0xff]  ;;  %v471_v36 = vld [vmem:[%s2153_s28 + $0x120] sm:$0xff]  ;;  %v468_v37 = vld [vmem:[%s2153_s28 + $0x108] sm:$0xff]  ;;  %v1412_v39 = vpack.c.bf16 %v460_v32, %v455_v31  ;;  %v2216_v40 = vpack.c.bf16 %v462_v34, %v457_v33 }
  0x98   : > { %v473_v38 = vld [vmem:[%s2153_s28 + $0x130] sm:$0xff]  ;;  %v1414_v41 = vpack.c.bf16 %v471_v36, %v466_v35  ;;  %v470_v44 = vld [vmem:[%s2153_s28 + $0x118] sm:$0xff]  ;;  %v467_v45 = vld [vmem:[%s2153_s28 + $0x100] sm:$0xff] }
  0x99   : > { %v2218_v42 = vpack.c.bf16 %v473_v38, %v468_v37  ;;  %v465_v43 = vld [vmem:[%s2153_s28 + $0xf0] sm:$0xff]  ;;  %v336_v46 = vld [vmem:[%s2146_s20 + $0x8] sm:$0xff]  ;;  %v358_v47 = vld [vmem:[%s2146_s20 + $0xb8] sm:$0xff] }
  0x9a   : > { %v472_v48 = vld [vmem:[%s2153_s28 + $0x128] sm:$0xff]  ;;  %v481_v50 = vld [vmem:[%s2153_s28 + $0x170] sm:$0xff]  ;;  %579 = vmatprep.mubr.f32.mxu0 %v336_v46  ;;  %v478_v51 = vld [vmem:[%s2153_s28 + $0x158] sm:$0xff]  ;;  %764 = vmatprep.mubr.f32.mxu1 %v358_v47  ;;  %v1416_v53 = vpack.c.bf16 %v470_v44, %v465_v43 }
  0x9b   : > { %v476_v49 = vld [vmem:[%s2153_s28 + $0x148] sm:$0xff]  ;;  %v483_v52 = vld [vmem:[%s2153_s28 + $0x180] sm:$0xff]  ;;  %v2232_v54 = vpack.c.bf16 %v472_v48, %v467_v45  ;;  %v477_v59 = vld [vmem:[%s2153_s28 + $0x150] sm:$0xff] }
  0x9c   : > { %1409 = vmatpush1.bf16.xpose.msra.mxu0 %v1408_v27  ;;  %1507 = vmatpush1.bf16.xpose.msra.mxu1 %v2202_v28  ;;  %v1418_v55 = vpack.c.bf16 %v481_v50, %v476_v49  ;;  %v2234_v56 = vpack.c.bf16 %v483_v52, %v478_v51  ;;  %v475_v57 = vld [vmem:[%s2153_s28 + $0x140] sm:$0xff]  ;;  %v480_v58 = vld [vmem:[%s2153_s28 + $0x168] sm:$0xff]  ;;  %v482_v60 = vld [vmem:[%s2153_s28 + $0x178] sm:$0xff] }
  0x9d   : > { %1411 = vmatprep.subr.bf16.mxu0 %v1410_v29  ;;  %1500 = vmatprep.subr.bf16.mxu1 %v2204_v30  ;;  %v486_v61 = vld [vmem:[%s2153_s28 + $0x198] sm:$0xff]  ;;  %v491_v62 = vld [vmem:[%s2153_s28 + $0x1c0] sm:$0xff]  ;;  %v488_v63 = vld [vmem:[%s2153_s28 + $0x1a8] sm:$0xff]  ;;  %v1420_v1 = vpack.c.bf16 %v480_v58, %v475_v57  ;;  %v2246_v2 = vpack.c.bf16 %v482_v60, %v477_v59 }
  0x9e   : > { %v493_v0 = vld [vmem:[%s2153_s28 + $0x1d0] sm:$0xff]  ;;  %v1422_v3 = vpack.c.bf16 %v491_v62, %v486_v61  ;;  %v490_v6 = vld [vmem:[%s2153_s28 + $0x1b8] sm:$0xff]  ;;  %v487_v7 = vld [vmem:[%s2153_s28 + $0x1a0] sm:$0xff] }
  0x9f   : > { %v2248_v4 = vpack.c.bf16 %v493_v0, %v488_v63  ;;  %v485_v5 = vld [vmem:[%s2153_s28 + $0x190] sm:$0xff]  ;;  %v492_v9 = vld [vmem:[%s2153_s28 + $0x1c8] sm:$0xff]  ;;  %v498_v12 = vld [vmem:[%s2153_s28 + $0x1f8] sm:$0xff] }
  0xa0   : > { %v496_v10 = vld [vmem:[%s2153_s28 + $0x1e8] sm:$0xff]  ;;  %v501_v11 = vld [vmem:[%s2153_s28 + $0x210] sm:$0xff]  ;;  %v503_v14 = vld [vmem:[%s2153_s28 + $0x220] sm:$0xff]  ;;  %v1424_v15 = vpack.c.bf16 %v490_v6, %v485_v5  ;;  %v2260_v16 = vpack.c.bf16 %v492_v9, %v487_v7 }
  0xa1   : > { %v1426_v17 = vpack.c.bf16 %v501_v11, %v496_v10  ;;  %v2262_v19 = vpack.c.bf16 %v503_v14, %v498_v12  ;;  %v495_v20 = vld [vmem:[%s2153_s28 + $0x1e0] sm:$0xff]  ;;  %v500_v21 = vld [vmem:[%s2153_s28 + $0x208] sm:$0xff]  ;;  %v497_v22 = vld [vmem:[%s2153_s28 + $0x1f0] sm:$0xff] }
  0xa2   : > { %v502_v23 = vld [vmem:[%s2153_s28 + $0x218] sm:$0xff]  ;;  %v511_v25 = vld [vmem:[%s2153_s28 + $0x260] sm:$0xff]  ;;  %v508_v26 = vld [vmem:[%s2153_s28 + $0x248] sm:$0xff]  ;;  %v1428_v29 = vpack.c.bf16 %v500_v21, %v495_v20 }
  0xa3   : > { %v506_v24 = vld [vmem:[%s2153_s28 + $0x238] sm:$0xff]  ;;  %v513_v27 = vld [vmem:[%s2153_s28 + $0x270] sm:$0xff]  ;;  %v2274_v31 = vpack.c.bf16 %v502_v23, %v497_v22  ;;  %v507_v36 = vld [vmem:[%s2153_s28 + $0x240] sm:$0xff] }
  0xa4   : > { %1413 = vmatpush1.bf16.xpose.msra.mxu0 %v1412_v39  ;;  %1508 = vmatpush1.bf16.xpose.msra.mxu1 %v2216_v40  ;;  %v1430_v32 = vpack.c.bf16 %v511_v25, %v506_v24  ;;  %v2276_v33 = vpack.c.bf16 %v513_v27, %v508_v26  ;;  %v505_v34 = vld [vmem:[%s2153_s28 + $0x230] sm:$0xff]  ;;  %v510_v35 = vld [vmem:[%s2153_s28 + $0x258] sm:$0xff]  ;;  %v512_v37 = vld [vmem:[%s2153_s28 + $0x268] sm:$0xff] }
  0xa5   : > { %1415 = vmatprep.subr.bf16.mxu0 %v1414_v41  ;;  %1501 = vmatprep.subr.bf16.mxu1 %v2218_v42  ;;  %v439_v38 = vld [vmem:[%s2153_s28 + $0x20] sm:$0xff]  ;;  %v444_v39 = vld [vmem:[%s2153_s28 + $0x48] sm:$0xff]  ;;  %v1432_v41 = vpack.c.bf16 %v510_v35, %v505_v34  ;;  %v2286_v43 = vpack.c.bf16 %v512_v37, %v507_v36  ;;  %v449_v45 = vld [vmem:[%s2153_s28 + $0x70] sm:$0xff] }
  0xa6   : > { %v1466_v44 = vpack.c.bf16 %v444_v39, %v439_v38  ;;  %v454_v46 = vld [vmem:[%s2153_s28 + $0x98] sm:$0xff]  ;;  %v335_v47 = vld [vmem:[%s2146_s20] sm:$0xff]  ;;  %v357_v48 = vld [vmem:[%s2146_s20 + $0xb0] sm:$0xff] }
  0xa7   : > { %v341_v49 = vld [vmem:[%s2146_s20 + $0x30] sm:$0xff]  ;;  %v363_v50 = vld [vmem:[%s2146_s20 + $0xe0] sm:$0xff]  ;;  %v1470_v51 = vpack.c.bf16 %v454_v46, %v449_v45  ;;  %v340_v52 = vld [vmem:[%s2146_s20 + $0x28] sm:$0xff] }
  0xa8   : > { %v459_v57 = vld [vmem:[%s2153_s28 + $0xc0] sm:$0xff]  ;;  %v464_v58 = vld [vmem:[%s2153_s28 + $0xe8] sm:$0xff]  ;;  %v345_v59 = vld [vmem:[%s2146_s20 + $0x50] sm:$0xff] }
  0xa9   : > { %v367_v60 = vld [vmem:[%s2146_s20 + $0x100] sm:$0xff]  ;;  %v373_v62 = vld [vmem:[%s2146_s20 + $0x130] sm:$0xff]  ;;  %v1474_v63 = vpack.c.bf16 %v464_v58, %v459_v57  ;;  %v356_v0 = vld [vmem:[%s2146_s20 + $0xa8] sm:$0xff] }
  0xaa   : > { %v351_v61 = vld [vmem:[%s2146_s20 + $0x80] sm:$0xff]  ;;  %v474_v5 = vld [vmem:[%s2153_s28 + $0x138] sm:$0xff]  ;;  %v377_v7 = vld [vmem:[%s2146_s20 + $0x150] sm:$0xff] }
  0xab   : > { %v355_v6 = vld [vmem:[%s2146_s20 + $0xa0] sm:$0xff]  ;;  %v361_v9 = vld [vmem:[%s2146_s20 + $0xd0] sm:$0xff]  ;;  %v366_v12 = vld [vmem:[%s2146_s20 + $0xf8] sm:$0xff] }
  0xac   : > { %1417 = vmatpush1.bf16.xpose.msra.mxu0 %v1416_v53  ;;  %1509 = vmatpush1.bf16.xpose.msra.mxu1 %v2232_v54  ;;  %v346_v53 = vld [vmem:[%s2146_s20 + $0x58] sm:$0xff]  ;;  %v383_v10 = vld [vmem:[%s2146_s20 + $0x180] sm:$0xff]  ;;  %v388_v14 = vld [vmem:[%s2146_s20 + $0x1a8] sm:$0xff] }
  0xad   : > { %1419 = vmatprep.subr.bf16.mxu0 %v1418_v55  ;;  %1502 = vmatprep.subr.bf16.mxu1 %v2234_v56  ;;  %v368_v55 = vld [vmem:[%s2146_s20 + $0x108] sm:$0xff]  ;;  %v365_v20 = vld [vmem:[%s2146_s20 + $0xf0] sm:$0xff]  ;;  %v387_v21 = vld [vmem:[%s2146_s20 + $0x1a0] sm:$0xff] }
  0xae   : > { %v371_v22 = vld [vmem:[%s2146_s20 + $0x120] sm:$0xff]  ;;  %v393_v23 = vld [vmem:[%s2146_s20 + $0x1d0] sm:$0xff]  ;;  %v376_v25 = vld [vmem:[%s2146_s20 + $0x148] sm:$0xff] }
  0xaf   : > { %v398_v26 = vld [vmem:[%s2146_s20 + $0x1f8] sm:$0xff]  ;;  %v489_v27 = vld [vmem:[%s2153_s28 + $0x1b0] sm:$0xff]  ;;  %v403_v36 = vld [vmem:[%s2146_s20 + $0x220] sm:$0xff] }
  0xb0   : > { %v397_v34 = vld [vmem:[%s2146_s20 + $0x1f0] sm:$0xff]  ;;  %v386_v38 = vld [vmem:[%s2146_s20 + $0x198] sm:$0xff]  ;;  %v408_v39 = vld [vmem:[%s2146_s20 + $0x248] sm:$0xff] }
  0xb1   : > { %v381_v35 = vld [vmem:[%s2146_s20 + $0x170] sm:$0xff]  ;;  %v407_v46 = vld [vmem:[%s2146_s20 + $0x240] sm:$0xff] }
  0xb2   : > { %v385_v45 = vld [vmem:[%s2146_s20 + $0x190] sm:$0xff]  ;;  %v423_v58 = vld [vmem:[%s2146_s20 + $0x2c0] sm:$0xff] }
  0xb3   : > { %v401_v57 = vld [vmem:[%s2146_s20 + $0x210] sm:$0xff] }
  0xb4   : > { %1421 = vmatpush1.bf16.xpose.msra.mxu0 %v1420_v1  ;;  %1510 = vmatpush1.bf16.xpose.msra.mxu1 %v2246_v2  ;;  %v378_v1 = vld [vmem:[%s2146_s20 + $0x158] sm:$0xff] }
  0xb5   : > { %1423 = vmatprep.subr.bf16.mxu0 %v1422_v3  ;;  %1503 = vmatprep.subr.bf16.mxu1 %v2248_v4  ;;  %v469_v3 = vld [vmem:[%s2153_s28 + $0x110] sm:$0xff] }
  0xb6   : > { %v1478_v11 = vpack.c.bf16 %v474_v5, %v469_v3  ;;  %v415_v3 = vld [vmem:[%s2146_s20 + $0x280] sm:$0xff]  ;;  %v344_v5 = vld [vmem:[%s2146_s20 + $0x48] sm:$0xff] }
  0xbc   : > { %1425 = vmatpush1.bf16.xpose.msra.mxu0 %v1424_v15  ;;  %1511 = vmatpush1.bf16.xpose.msra.mxu1 %v2260_v16  ;;  %v479_v15 = vld [vmem:[%s2153_s28 + $0x160] sm:$0xff] }
  0xbd   : > { %1427 = vmatprep.subr.bf16.mxu0 %v1426_v17  ;;  %1504 = vmatprep.subr.bf16.mxu1 %v2262_v19  ;;  %v484_v17 = vld [vmem:[%s2153_s28 + $0x188] sm:$0xff] }
  0xbe   : > { %v1482_v24 = vpack.c.bf16 %v484_v17, %v479_v15  ;;  %v430_v15 = vld [vmem:[%s2146_s20 + $0x2f8] sm:$0xff] }
  0xbf   : > { %v374_v17 = vld [vmem:[%s2146_s20 + $0x138] sm:$0xff] }
  0xc4   : > { %1429 = vmatpush1.bf16.xpose.msra.mxu0 %v1428_v29  ;;  %1512 = vmatpush1.bf16.xpose.msra.mxu1 %v2274_v31  ;;  %v494_v29 = vld [vmem:[%s2153_s28 + $0x1d8] sm:$0xff] }
  0xc5   : > { %1431 = vmatprep.subr.bf16.mxu0 %v1430_v32  ;;  %1505 = vmatprep.subr.bf16.mxu1 %v2276_v33  ;;  %v375_v32 = vld [vmem:[%s2146_s20 + $0x140] sm:$0xff]  ;;  %v1486_v37 = vpack.c.bf16 %v494_v29, %v489_v27 }
  0xc6   : > { %v399_v27 = vld [vmem:[%s2146_s20 + $0x200] sm:$0xff] }
  0xc7   : > { %v347_v29 = vld [vmem:[%s2146_s20 + $0x60] sm:$0xff] }
  0xcc   : > { %1433 = vmatpush1.bf16.xpose.msra.mxu0 %v1432_v41  ;;  %1513 = vmatpush1.bf16.xpose.msra.mxu1 %v2286_v43  ;;  %v499_v41 = vld [vmem:[%s2153_s28 + $0x200] sm:$0xff] }
  0xcd   : > { %1435 = vmatprep.subr.bf16.mxu0 %v2179_v8  ;;  %1467 = vmatprep.subr.bf16.mxu1 %v1466_v44  ;;  %v362_v8 = vld [vmem:[%s2146_s20 + $0xd8] sm:$0xff] }
  0xd3   : > { %580 = vmatmul.mubr.f32.vlgmr.msra.gmra.mrb[0].mxu0 %v335_v47  ;;  %765 = vmatmul.mubr.f32.vlgmr.msra.gmra.mrb[0].mxu1 %v357_v48  ;;  %v391_v47 = vld [vmem:[%s2146_s20 + $0x1c0] sm:$0xff]  ;;  %v413_v48 = vld [vmem:[%s2146_s20 + $0x270] sm:$0xff] }
  0xd4   : > { %584 = vmatprep.mubr.f32.mxu0 %v341_v49  ;;  %1469 = vmatpush3.bf16.xpose.msra.mxu1 %v1466_v44  ;;  %v504_v44 = vld [vmem:[%s2153_s28 + $0x228] sm:$0xff] }
  0xd5   : > { %769 = vmatprep.mubr.f32.mxu1 %v363_v50  ;;  %1471 = vmatprep.subr.bf16.mxu1 %v1470_v51  ;;  %v1490_v49 = vpack.c.bf16 %v504_v44, %v499_v41  ;;  %v396_v50 = vld [vmem:[%s2146_s20 + $0x1e8] sm:$0xff] }
  0xd6   : > { %1437 = vmatpush1.bf16.xpose.msra.mxu0 %v2184_v13  ;;  %v350_v13 = vld [vmem:[%s2146_s20 + $0x78] sm:$0xff] }
  0xd7   : > { %585 = vmatmul.mubr.f32.gmra.mrb[2].mxu0 %v340_v52  ;;  %1439 = vmatprep.subr.bf16.mxu0 %v2190_v18  ;;  %v372_v18 = vld [vmem:[%s2146_s20 + $0x128] sm:$0xff]  ;;  %v509_v52 = vld [vmem:[%s2153_s28 + $0x250] sm:$0xff] }
  0xd8   : > { %770 = vmatmul.mubr.f32.gmra.mrb[2].mxu1 %v362_v8  ;;  %589 = vmatprep.mubr.f32.mxu0 %v346_v53  ;;  %v514_v8 = vld [vmem:[%s2153_s28 + $0x278] sm:$0xff]  ;;  %v395_v53 = vld [vmem:[%s2146_s20 + $0x1e0] sm:$0xff] }
  0xd9   : > { %774 = vmatprep.mubr.f32.mxu1 %v368_v55  ;;  %v417_v55 = vld [vmem:[%s2146_s20 + $0x290] sm:$0xff] }
  0xdb   : > { %590 = vmatmul.mubr.f32.gmra.mrb[4].mxu0 %v345_v59  ;;  %v1494_v59 = vpack.c.bf16 %v514_v8, %v509_v52 }
  0xdc   : > { %775 = vmatmul.mubr.f32.gmra.mrb[4].mxu1 %v367_v60  ;;  %594 = vmatprep.mubr.f32.mxu0 %v351_v61  ;;  %v406_v60 = vld [vmem:[%s2146_s20 + $0x238] sm:$0xff]  ;;  %v428_v61 = vld [vmem:[%s2146_s20 + $0x2e8] sm:$0xff] }
  0xdd   : > { %1473 = vmatpush3.bf16.xpose.msra.mxu1 %v1470_v51  ;;  %779 = vmatprep.mubr.f32.mxu1 %v373_v62  ;;  %v418_v51 = vld [vmem:[%s2146_s20 + $0x298] sm:$0xff]  ;;  %v405_v62 = vld [vmem:[%s2146_s20 + $0x230] sm:$0xff] }
  0xde   : > { %1475 = vmatprep.subr.bf16.mxu1 %v1474_v63  ;;  %1441 = vmatpush1.bf16.xpose.msra.mxu0 %v2202_v28  ;;  %v360_v28 = vld [vmem:[%s2146_s20 + $0xc8] sm:$0xff] }
  0xdf   : > { %595 = vmatmul.mubr.f32.gmra.mrb[6].mxu0 %v350_v13  ;;  %1443 = vmatprep.subr.bf16.mxu0 %v2204_v30  ;;  %v382_v30 = vld [vmem:[%s2146_s20 + $0x178] sm:$0xff]  ;;  %v411_v13 = vld [vmem:[%s2146_s20 + $0x260] sm:$0xff] }
  0xe0   : > { %780 = vmatmul.mubr.f32.gmra.mrb[6].mxu1 %v372_v18  ;;  %599 = vmatprep.mubr.f32.mxu0 %v356_v0  ;;  %v433_v18 = vld [vmem:[%s2146_s20 + $0x310] sm:$0xff]  ;;  %v416_v0 = vld [vmem:[%s2146_s20 + $0x288] sm:$0xff] }
  0xe1   : > { %784 = vmatprep.mubr.f32.mxu1 %v378_v1  ;;  %v339_v1 = vld [vmem:[%s2146_s20 + $0x20] sm:$0xff] }
  0xe3   : > { %600 = vmatmul.mubr.f32.gmra.mrb[8].mxu0 %v355_v6  ;;  %v421_v6 = vld [vmem:[%s2146_s20 + $0x2b0] sm:$0xff] }
  0xe4   : > { %785 = vmatmul.mubr.f32.gmra.mrb[8].mxu1 %v377_v7  ;;  %604 = vmatprep.mubr.f32.mxu0 %v361_v9  ;;  %v349_v7 = vld [vmem:[%s2146_s20 + $0x70] sm:$0xff]  ;;  %v420_v9 = vld [vmem:[%s2146_s20 + $0x2a8] sm:$0xff] }
  0xe5   : > { %1477 = vmatpush3.bf16.xpose.msra.mxu1 %v1474_v63  ;;  %789 = vmatprep.mubr.f32.mxu1 %v383_v10  ;;  %v427_v63 = vld [vmem:[%s2146_s20 + $0x2e0] sm:$0xff]  ;;  %v426_v10 = vld [vmem:[%s2146_s20 + $0x2d8] sm:$0xff] }
  0xe6   : > { %1479 = vmatprep.subr.bf16.mxu1 %v1478_v11  ;;  %1445 = vmatpush1.bf16.xpose.msra.mxu0 %v2216_v40  ;;  %v370_v40 = vld [vmem:[%s2146_s20 + $0x118] sm:$0xff] }
  0xe7   : > { %605 = vmatmul.mubr.f32.gmra.mrb[10].mxu0 %v360_v28  ;;  %1447 = vmatprep.subr.bf16.mxu0 %v2218_v42  ;;  %v392_v42 = vld [vmem:[%s2146_s20 + $0x1c8] sm:$0xff]  ;;  %v425_v28 = vld [vmem:[%s2146_s20 + $0x2d0] sm:$0xff] }
  0xe8   : > { %790 = vmatmul.mubr.f32.gmra.mrb[10].mxu1 %v382_v30  ;;  %609 = vmatprep.mubr.f32.mxu0 %v366_v12  ;;  %v364_v30 = vld [vmem:[%s2146_s20 + $0xe8] sm:$0xff]  ;;  %v431_v12 = vld [vmem:[%s2146_s20 + $0x300] sm:$0xff] }
  0xe9   : > { %794 = vmatprep.mubr.f32.mxu1 %v388_v14  ;;  %v369_v14 = vld [vmem:[%s2146_s20 + $0x110] sm:$0xff] }
  0xeb   : > { %610 = vmatmul.mubr.f32.gmra.mrb[12].mxu0 %v365_v20  ;;  %v338_v20 = vld [vmem:[%s2146_s20 + $0x18] sm:$0xff] }
  0xec   : > { %795 = vmatmul.mubr.f32.gmra.mrb[12].mxu1 %v387_v21  ;;  %614 = vmatprep.mubr.f32.mxu0 %v371_v22  ;;  %v379_v21 = vld [vmem:[%s2146_s20 + $0x160] sm:$0xff]  ;;  %v337_v22 = vld [vmem:[%s2146_s20 + $0x10] sm:$0xff] }
  0xed   : > { %1481 = vmatpush3.bf16.xpose.msra.mxu1 %v1478_v11  ;;  %799 = vmatprep.mubr.f32.mxu1 %v393_v23  ;;  %v359_v11 = vld [vmem:[%s2146_s20 + $0xc0] sm:$0xff]  ;;  %v384_v23 = vld [vmem:[%s2146_s20 + $0x188] sm:$0xff] }
  0xee   : > { %1483 = vmatprep.subr.bf16.mxu1 %v1482_v24  ;;  %1449 = vmatpush1.bf16.xpose.msra.mxu0 %v2232_v54  ;;  %v380_v54 = vld [vmem:[%s2146_s20 + $0x168] sm:$0xff] }
  0xef   : > { %615 = vmatmul.mubr.f32.gmra.mrb[14].mxu0 %v370_v40  ;;  %1451 = vmatprep.subr.bf16.mxu0 %v2234_v56  ;;  %v402_v56 = vld [vmem:[%s2146_s20 + $0x218] sm:$0xff]  ;;  %v389_v40 = vld [vmem:[%s2146_s20 + $0x1b0] sm:$0xff] }
  0xf0   : > { %800 = vmatmul.mubr.f32.gmra.mrb[14].mxu1 %v392_v42  ;;  %619 = vmatprep.mubr.f32.mxu0 %v376_v25  ;;  %v342_v42 = vld [vmem:[%s2146_s20 + $0x38] sm:$0xff] }
  0xf1   : > { %804 = vmatprep.mubr.f32.mxu1 %v398_v26  ;;  %v394_v25 = vld [vmem:[%s2146_s20 + $0x1d8] sm:$0xff]  ;;  %v348_v26 = vld [vmem:[%s2146_s20 + $0x68] sm:$0xff] }
  0xf3   : > { %620 = vmatmul.mubr.f32.gmra.mrb[16].mxu0 %v375_v32  ;;  %v404_v32 = vld [vmem:[%s2146_s20 + $0x228] sm:$0xff] }
  0xf4   : > { %805 = vmatmul.mubr.f32.gmra.mrb[16].mxu1 %v397_v34  ;;  %624 = vmatprep.mubr.f32.mxu0 %v381_v35  ;;  %v353_v34 = vld [vmem:[%s2146_s20 + $0x90] sm:$0xff] }
  0xf5   : > { %1485 = vmatpush3.bf16.xpose.msra.mxu1 %v1482_v24  ;;  %809 = vmatprep.mubr.f32.mxu1 %v403_v36  ;;  %v343_v24 = vld [vmem:[%s2146_s20 + $0x40] sm:$0xff]  ;;  %v409_v35 = vld [vmem:[%s2146_s20 + $0x250] sm:$0xff]  ;;  %v352_v36 = vld [vmem:[%s2146_s20 + $0x88] sm:$0xff] }
  0xf6   : > { %1487 = vmatprep.subr.bf16.mxu1 %v1486_v37  ;;  %1453 = vmatpush1.bf16.xpose.msra.mxu0 %v2246_v2  ;;  %v390_v2 = vld [vmem:[%s2146_s20 + $0x1b8] sm:$0xff] }
  0xf7   : > { %625 = vmatmul.mubr.f32.gmra.mrb[18].mxu0 %v380_v54  ;;  %1455 = vmatprep.subr.bf16.mxu0 %v2248_v4  ;;  %v412_v4 = vld [vmem:[%s2146_s20 + $0x268] sm:$0xff]  ;;  %v419_v54 = vld [vmem:[%s2146_s20 + $0x2a0] sm:$0xff] }
  0xf8   : > { %810 = vmatmul.mubr.f32.gmra.mrb[18].mxu1 %v402_v56  ;;  %629 = vmatprep.mubr.f32.mxu0 %v386_v38  ;;  %v424_v56 = vld [vmem:[%s2146_s20 + $0x2c8] sm:$0xff]  ;;  %v429_v38 = vld [vmem:[%s2146_s20 + $0x2f0] sm:$0xff] }
  0xf9   : > { %814 = vmatprep.mubr.f32.mxu1 %v408_v39  ;;  %v434_v39 = vld [vmem:[%s2146_s20 + $0x318] sm:$0xff] }
  0xfb   : > { %630 = vmatmul.mubr.f32.gmra.mrb[20].mxu0 %v385_v45 }
  0xfc   : > { %815 = vmatmul.mubr.f32.gmra.mrb[20].mxu1 %v407_v46  ;;  %634 = vmatprep.mubr.f32.mxu0 %v391_v47 }
  0xfd   : > { %1489 = vmatpush3.bf16.xpose.msra.mxu1 %v1486_v37  ;;  %819 = vmatprep.mubr.f32.mxu1 %v413_v48  ;;  %v414_v37 = vld [vmem:[%s2146_s20 + $0x278] sm:$0xff] }
  0xfe   : > { %1491 = vmatprep.subr.bf16.mxu1 %v1490_v49  ;;  %1457 = vmatpush1.bf16.xpose.msra.mxu0 %v2260_v16  ;;  %v400_v16 = vld [vmem:[%s2146_s20 + $0x208] sm:$0xff] }
  0xff   : > { %635 = vmatmul.mubr.f32.gmra.mrb[22].mxu0 %v390_v2  ;;  %1459 = vmatprep.subr.bf16.mxu0 %v2262_v19  ;;  %v422_v19 = vld [vmem:[%s2146_s20 + $0x2b8] sm:$0xff] }
 0x100   : > { %820 = vmatmul.mubr.f32.gmra.mrb[22].mxu1 %v412_v4  ;;  %639 = vmatprep.mubr.f32.mxu0 %v396_v50 }
 0x101   : > { %824 = vmatprep.mubr.f32.mxu1 %v418_v51 }
 0x103   : > { %640 = vmatmul.mubr.f32.gmra.mrb[24].mxu0 %v395_v53 }
 0x104   : > { %825 = vmatmul.mubr.f32.gmra.mrb[24].mxu1 %v417_v55  ;;  %644 = vmatprep.mubr.f32.mxu0 %v401_v57 }
 0x105   : > { %1493 = vmatpush3.bf16.xpose.msra.mxu1 %v1490_v49  ;;  %829 = vmatprep.mubr.f32.mxu1 %v423_v58 }
 0x106   : > { %1495 = vmatprep.subr.bf16.mxu1 %v1494_v59  ;;  %1461 = vmatpush1.bf16.xpose.msra.mxu0 %v2274_v31  ;;  %v410_v31 = vld [vmem:[%s2146_s20 + $0x258] sm:$0xff] }
 0x107   : > { %645 = vmatmul.mubr.f32.gmra.mrb[26].mxu0 %v400_v16  ;;  %1463 = vmatprep.subr.bf16.mxu0 %v2276_v33  ;;  %v432_v33 = vld [vmem:[%s2146_s20 + $0x308] sm:$0xff] }
 0x108   : > { %830 = vmatmul.mubr.f32.gmra.mrb[26].mxu1 %v422_v19  ;;  %649 = vmatprep.mubr.f32.mxu0 %v406_v60 }
 0x109   : > { %834 = vmatprep.mubr.f32.mxu1 %v428_v61 }
 0x10b   : > { %650 = vmatmul.mubr.f32.gmra.mrb[28].mxu0 %v405_v62 }
 0x10c   : > { %835 = vmatmul.mubr.f32.gmra.mrb[28].mxu1 %v427_v63  ;;  %654 = vmatprep.mubr.f32.mxu0 %v411_v13 }
 0x10d   : > { %1497 = vmatpush3.bf16.xpose.msra.mxu1 %v1494_v59  ;;  %839 = vmatprep.mubr.f32.mxu1 %v433_v18 }
 0x10e   : > { %1465 = vmatpush1.bf16.xpose.msra.mxu0 %v2286_v43  ;;  %v354_v43 = vld [vmem:[%s2146_s20 + $0x98] sm:$0xff] }
 0x10f   : > { %655 = vmatmul.mubr.f32.gmra.mrb[30].mxu0 %v410_v31 }
 0x110   : > { %840 = vmatmul.mubr.f32.gmra.mrb[30].mxu1 %v432_v33  ;;  %659 = vmatprep.mubr.f32.mxu0 %v416_v0 }
 0x111   : > { %1372 = vmatprep.mubr.f32.mxu1 %v339_v1 }
 0x113   : > { %660 = vmatmul.mubr.f32.gmra.mrb[32].mxu0 %v415_v3 }
 0x114   : > { %1373 = vmatmul.mubr.f32.vlgmr.msra.gmra.mrb[32].mxu1 %v344_v5  ;;  %664 = vmatprep.mubr.f32.mxu0 %v421_v6 }
 0x115   : > { %1375 = vmatprep.mubr.f32.mxu1 %v349_v7 }
 0x117   : > { %665 = vmatmul.mubr.f32.gmra.mrb[34].mxu0 %v420_v9 }
 0x118   : > { %1376 = vmatmul.mubr.f32.gmra.mrb[34].mxu1 %v354_v43  ;;  %669 = vmatprep.mubr.f32.mxu0 %v426_v10 }
 0x119   : > { %1378 = vmatprep.mubr.f32.mxu1 %v359_v11 }
 0x11b   : > { %670 = vmatmul.mubr.f32.gmra.mrb[36].mxu0 %v425_v28 }
 0x11c   : > { %1379 = vmatmul.mubr.f32.gmra.mrb[36].mxu1 %v364_v30  ;;  %674 = vmatprep.mubr.f32.mxu0 %v431_v12 }
 0x11d   : > { %1381 = vmatprep.mubr.f32.mxu1 %v369_v14 }
 0x11f   : > { %675 = vmatmul.mubr.f32.gmra.mrb[38].mxu0 %v430_v15 }
 0x120   : > { %1382 = vmatmul.mubr.f32.gmra.mrb[38].mxu1 %v374_v17  ;;  %744 = vmatprep.mubr.f32.mxu0 %v338_v20 }
 0x121   : > { %1384 = vmatprep.mubr.f32.mxu1 %v379_v21 }
 0x123   : > { %745 = vmatmul.mubr.f32.vlgmr.msra.gmra.mrb[0].mxu0 %v337_v22 }
 0x124   : > { %1385 = vmatmul.mubr.f32.gmra.mrb[40].mxu1 %v384_v23  ;;  %749 = vmatprep.mubr.f32.mxu0 %v343_v24 }
 0x125   : > { %1387 = vmatprep.mubr.f32.mxu1 %v389_v40 }
 0x127   : > { %750 = vmatmul.mubr.f32.gmra.mrb[2].mxu0 %v342_v42 }
 0x128   : > { %1388 = vmatmul.mubr.f32.gmra.mrb[42].mxu1 %v394_v25  ;;  %754 = vmatprep.mubr.f32.mxu0 %v348_v26 }
 0x129   : > { %1390 = vmatprep.mubr.f32.mxu1 %v399_v27 }
 0x12b   : > { %755 = vmatmul.mubr.f32.gmra.mrb[4].mxu0 %v347_v29 }
 0x12c   : > { %1391 = vmatmul.mubr.f32.gmra.mrb[44].mxu1 %v404_v32  ;;  %759 = vmatprep.mubr.f32.mxu0 %v353_v34 }
 0x12d   : > { %1393 = vmatprep.mubr.f32.mxu1 %v409_v35 }
 0x12f   : > { %760 = vmatmul.mubr.f32.gmra.mrb[6].mxu0 %v352_v36 }
 0x130   : > { %1394 = vmatmul.mubr.f32.gmra.mrb[46].mxu1 %v414_v37 }
 0x131   : > { %1396 = vmatprep.mubr.f32.mxu1 %v419_v54 }
 0x134   : > { %1397 = vmatmul.mubr.f32.gmra.mrb[48].mxu1 %v424_v56 }
 0x135   : > { %1399 = vmatprep.mubr.f32.mxu1 %v429_v38 }
 0x138   : > { %1400 = vmatmul.mubr.f32.gmra.mrb[50].mxu1 %v434_v39 }
 0x1a6   : > { %v766_v41 = vpop.f32.mrb[0].mxu1 }
 0x1a7   : > { %v768_v44 = vpop.f32.mrb[1].mxu1 }
 0x1ab   : > { %v771_v45 = vpop.f32.mrb[2].mxu1 }
 0x1ac   : > { %v773_v46 = vpop.f32.mrb[3].mxu1 }
 0x1af   : > { %v776_v47 = vpop.f32.mrb[4].mxu1 }
 0x1b0   : > { %v778_v48 = vpop.f32.mrb[5].mxu1 }
 0x1b3   : > { %v781_v49 = vpop.f32.mrb[6].mxu1 }
 0x1b4   : > { %v783_v2 = vpop.f32.mrb[7].mxu1 }
 0x1b6   : > { %v601_v4 = vpop.f32.mrb[8].mxu0 }
 0x1b7   : > { %v2417_v50 = vadd.f32 %v766_v41, %v601_v4  ;;  %v786_v51 = vpop.f32.mrb[8].mxu1  ;;  %v603_v52 = vpop.f32.mrb[9].mxu0 }
 0x1b8   : > { %v788_v8 = vpop.f32.mrb[9].mxu1 }
 0x1ba   : > { %v606_v53 = vpop.f32.mrb[10].mxu0 }
 0x1bb   : > { %v2419_v55 = vadd.f32 %v771_v45, %v606_v53  ;;  %v791_v57 = vpop.f32.mrb[10].mxu1  ;;  %v608_v58 = vpop.f32.mrb[11].mxu0 }
 0x1bc   : > { %v793_v59 = vpop.f32.mrb[11].mxu1 }
 0x1be   : > { %v611_v16 = vpop.f32.mrb[12].mxu0 }
 0x1bf   : > { %v2421_v19 = vadd.f32 %v776_v47, %v611_v16  ;;  %v796_v60 = vpop.f32.mrb[12].mxu1  ;;  %v613_v61 = vpop.f32.mrb[13].mxu0  ;;  %v320_v16 = vld [vmem:[#allocation2 + $0x28] sm:$0xff] }
 0x1c0   : > { %v798_v62 = vpop.f32.mrb[13].mxu1 }
 0x1c2   : > { %v616_v63 = vpop.f32.mrb[14].mxu0 }
 0x1c3   : > { %v2423_v13 = vadd.f32 %v781_v49, %v616_v63  ;;  %v801_v18 = vpop.f32.mrb[14].mxu1  ;;  %v618_v31 = vpop.f32.mrb[15].mxu0  ;;  %v319_v63 = vld [vmem:[#allocation2 + $0x20] sm:$0xff] }
 0x1c4   : > { %v803_v33 = vpop.f32.mrb[15].mxu1 }
 0x1c6   : > { %v621_v0 = vpop.f32.mrb[16].mxu0 }
 0x1c7   : > { %v2425_v1 = vadd.f32 %v786_v51, %v621_v0  ;;  %v806_v3 = vpop.f32.mrb[16].mxu1  ;;  %v623_v5 = vpop.f32.mrb[17].mxu0 }
 0x1c8   : > { %v808_v6 = vpop.f32.mrb[17].mxu1 }
 0x1c9   : > { %v322_v6 = vld [vmem:[#allocation2 + $0x38] sm:$0xff] }
 0x1ca   : > { %v626_v7 = vpop.f32.mrb[18].mxu0 }
 0x1cb   : > { %v2427_v9 = vadd.f32 %v791_v57, %v626_v7  ;;  %v811_v43 = vpop.f32.mrb[18].mxu1  ;;  %v628_v10 = vpop.f32.mrb[19].mxu0 }
 0x1cc   : > { %v813_v11 = vpop.f32.mrb[19].mxu1 }
 0x1cd   : > { %v321_v11 = vld [vmem:[#allocation2 + $0x30] sm:$0xff] }
 0x1ce   : > { %v631_v28 = vpop.f32.mrb[20].mxu0 }
 0x1cf   : > { %v2429_v30 = vadd.f32 %v796_v60, %v631_v28  ;;  %v816_v12 = vpop.f32.mrb[20].mxu1  ;;  %v633_v14 = vpop.f32.mrb[21].mxu0 }
 0x1d0   : > { %v818_v15 = vpop.f32.mrb[21].mxu1  ;;  %v315_v14 = vld [vmem:[#allocation2] sm:$0xff] }
 0x1d2   : > { %v636_v17 = vpop.f32.mrb[22].mxu0 }
 0x1d3   : > { %v2431_v20 = vadd.f32 %v801_v18, %v636_v17  ;;  %v821_v21 = vpop.f32.mrb[22].mxu1  ;;  %v638_v22 = vpop.f32.mrb[23].mxu0 }
 0x1d4   : > { %v823_v23 = vpop.f32.mrb[23].mxu1 }
 0x1d6   : > { %v641_v24 = vpop.f32.mrb[24].mxu0 }
 0x1d7   : > { %v2433_v40 = vadd.f32 %v806_v3, %v641_v24  ;;  %v826_v42 = vpop.f32.mrb[24].mxu1  ;;  %v643_v25 = vpop.f32.mrb[25].mxu0 }
 0x1d8   : > { %v828_v26 = vpop.f32.mrb[25].mxu1 }
 0x1da   : > { %v646_v27 = vpop.f32.mrb[26].mxu0 }
 0x1db   : > { %v2435_v29 = vadd.f32 %v811_v43, %v646_v27  ;;  %v831_v32 = vpop.f32.mrb[26].mxu1  ;;  %v648_v34 = vpop.f32.mrb[27].mxu0 }
 0x1dc   : > { %v833_v35 = vpop.f32.mrb[27].mxu1 }
 0x1de   : > { %v651_v36 = vpop.f32.mrb[28].mxu0 }
 0x1df   : > { %v2437_v37 = vadd.f32 %v816_v12, %v651_v36  ;;  %v836_v54 = vpop.f32.mrb[28].mxu1  ;;  %v653_v56 = vpop.f32.mrb[29].mxu0  ;;  %v326_v36 = vld [vmem:[#allocation2 + $0x58] sm:$0xff] }
 0x1e0   : > { %v838_v38 = vpop.f32.mrb[29].mxu1 }
 0x1e2   : > { %v656_v39 = vpop.f32.mrb[30].mxu0 }
 0x1e3   : > { %v2439_v41 = vadd.f32 %v821_v21, %v656_v39  ;;  %v841_v44 = vpop.f32.mrb[30].mxu1  ;;  %v658_v45 = vpop.f32.mrb[31].mxu0  ;;  %v324_v21 = vld [vmem:[#allocation2 + $0x48] sm:$0xff]  ;;  %v325_v39 = vld [vmem:[#allocation2 + $0x50] sm:$0xff] }
 0x1e4   : > { %v843_v46 = vpop.f32.mrb[31].mxu1 }
 0x1e6   : > { %v661_v47 = vpop.f32.mrb[32].mxu0 }
 0x1e7   : > { %v2441_v48 = vadd.f32 %v826_v42, %v661_v47  ;;  %v1374_v49 = vpop.f32.mrb[32].mxu1  ;;  %v663_v2 = vpop.f32.mrb[33].mxu0  ;;  %v323_v42 = vld [vmem:[#allocation2 + $0x40] sm:$0xff] }
 0x1e8   : > { %v911_v4 = vpop.f32.mrb[33].mxu1 }
 0x1ea   : > { %v666_v51 = vpop.f32.mrb[34].mxu0 }
 0x1eb   : > { %v2443_v52 = vadd.f32 %v831_v32, %v666_v51  ;;  %v2445_v8 = vpop.f32.mrb[34].mxu1  ;;  %v668_v53 = vpop.f32.mrb[35].mxu0  ;;  %v316_v32 = vld [vmem:[#allocation2 + $0x8] sm:$0xff] }
 0x1ec   : > { %v921_v57 = vpop.f32.mrb[35].mxu1  ;;  %v328_v51 = vld [vmem:[#allocation2 + $0x68] sm:$0xff] }
 0x1ee   : > { %v671_v58 = vpop.f32.mrb[36].mxu0 }
 0x1ef   : > { %v2447_v59 = vadd.f32 %v836_v54, %v671_v58  ;;  %v1380_v60 = vpop.f32.mrb[36].mxu1  ;;  %v673_v61 = vpop.f32.mrb[37].mxu0 }
 0x1f0   : > { %v937_v62 = vadd.f32 %v1380_v60, %v2419_v55  ;;  %v931_v18 = vpop.f32.mrb[37].mxu1 }
 0x1f1   : > { %v932_v31 = vadd.f32 %v931_v18, %v2417_v50 }
 0x1f2   : > { %v1015_v33 = vadd.f32 %v937_v62, %v320_v16  ;;  %v676_v0 = vpop.f32.mrb[38].mxu0  ;;  %v327_v16 = vld [vmem:[#allocation2 + $0x60] sm:$0xff] }
 0x1f3   : > { %v1014_v3 = vadd.f32 %v932_v31, %v319_v63  ;;  %v2451_v5 = vadd.f32 %v841_v44, %v676_v0  ;;  %v1383_v7 = vpop.f32.mrb[38].mxu1  ;;  %v678_v43 = vpop.f32.mrb[39].mxu0 }
 0x1f4   : > { %1035 = vst [vmem:[#allocation2 + $0x28] sm:$0xff] %v1015_v33  ;;  %v947_v10 = vadd.f32 %v1383_v7, %v2423_v13  ;;  %v941_v28 = vpop.f32.mrb[39].mxu1 }
 0x1f5   : > { %1034 = vst [vmem:[#allocation2 + $0x20] sm:$0xff] %v1014_v3  ;;  %v942_v55 = vadd.f32 %v941_v28, %v2421_v19 }
 0x1f6   : > { %v1017_v12 = vadd.f32 %v947_v10, %v322_v6  ;;  %v746_v15 = vpop.f32.mrb[0].mxu0 }
 0x1f7   : > { %v1016_v50 = vadd.f32 %v942_v55, %v321_v11  ;;  %v912_v17 = vadd.f32 %v911_v4, %v746_v15  ;;  %v1386_v22 = vpop.f32.mrb[40].mxu1  ;;  %v748_v23 = vpop.f32.mrb[1].mxu0  ;;  %v332_v11 = vld [vmem:[#allocation2 + $0x88] sm:$0xff]  ;;  %v331_v55 = vld [vmem:[#allocation2 + $0x80] sm:$0xff] }
 0x1f8   : > { %1037 = vst [vmem:[#allocation2 + $0x38] sm:$0xff] %v1017_v12  ;;  %v957_v24 = vadd.f32 %v1386_v22, %v2427_v9  ;;  %v951_v25 = vpop.f32.mrb[41].mxu1 }
 0x1f9   : > { %1036 = vst [vmem:[#allocation2 + $0x30] sm:$0xff] %v1016_v50  ;;  %v1010_v13 = vadd.f32 %v912_v17, %v315_v14  ;;  %v952_v26 = vadd.f32 %v951_v25, %v2425_v1  ;;  %v317_v1 = vld [vmem:[#allocation2 + $0x10] sm:$0xff]  ;;  %v334_v50 = vld [vmem:[#allocation2 + $0x98] sm:$0xff] }
 0x1fa   : > { %v1019_v27 = vadd.f32 %v957_v24, %v324_v21  ;;  %v751_v19 = vpop.f32.mrb[2].mxu0  ;;  %v333_v21 = vld [vmem:[#allocation2 + $0x90] sm:$0xff] }
 0x1fb   : > { %1030 = vst [vmem:[#allocation2] sm:$0xff] %v1010_v13  ;;  %v1018_v34 = vadd.f32 %v952_v26, %v323_v42  ;;  %v917_v35 = vadd.f32 %v1374_v49, %v751_v19  ;;  %v1389_v54 = vpop.f32.mrb[42].mxu1  ;;  %v753_v56 = vpop.f32.mrb[3].mxu0 }
 0x1fc   : > { %1039 = vst [vmem:[#allocation2 + $0x48] sm:$0xff] %v1019_v27  ;;  %v967_v38 = vadd.f32 %v1389_v54, %v2431_v20  ;;  %v961_v9 = vpop.f32.mrb[43].mxu1  ;;  %v1058_v27 = vld [vmem:[#allocation2 + $0x20] sm:$0xff] (!%p1298_p11) }
 0x1fd   : > { %1038 = vst [vmem:[#allocation2 + $0x40] sm:$0xff] %v1018_v34  ;;  %v1011_v44 = vadd.f32 %v917_v35, %v316_v32  ;;  %v962_v45 = vadd.f32 %v961_v9, %v2429_v30  ;;  %v318_v30 = vld [vmem:[#allocation2 + $0x18] sm:$0xff]  ;;  %v1078_v34 = vmul.f32 (!%p1298_p11), 2.0, %v1058_v27  ;;  %v1059_v35 = vld [vmem:[#allocation2 + $0x28] sm:$0xff] (!%p1298_p11) }
 0x1fe   : > { %v1021_v46 = vadd.f32 %v967_v38, %v326_v36  ;;  %v756_v47 = vpop.f32.mrb[4].mxu0 }
 0x1ff   : > { %1031 = vst [vmem:[#allocation2 + $0x8] sm:$0xff] %v1011_v44  ;;  %v1020_v2 = vadd.f32 %v962_v45, %v325_v39  ;;  %v922_v4 = vadd.f32 %v921_v57, %v756_v47  ;;  %v1392_v49 = vpop.f32.mrb[44].mxu1  ;;  %v758_v53 = vpop.f32.mrb[5].mxu0  ;;  %v330_v57 = vld [vmem:[#allocation2 + $0x78] sm:$0xff]  ;;  %v1079_v39 = vmul.f32 (!%p1298_p11), 2.0, %v1059_v35 }
 0x200   : > { %1041 = vst [vmem:[#allocation2 + $0x58] sm:$0xff] %v1021_v46  ;;  %v977_v58 = vadd.f32 %v1392_v49, %v2435_v29  ;;  %v971_v20 = vpop.f32.mrb[45].mxu1  ;;  %v329_v29 = vld [vmem:[#allocation2 + $0x70] sm:$0xff]  ;;  %v1061_v54 = vld [vmem:[#allocation2 + $0x38] sm:$0xff] (!%p1298_p11) }
 0x201   : > { %1040 = vst [vmem:[#allocation2 + $0x50] sm:$0xff] %v1020_v2  ;;  %v1012_v60 = vadd.f32 %v922_v4, %v317_v1  ;;  %v972_v61 = vadd.f32 %v971_v20, %v2433_v40  ;;  %v1060_v36 = vld [vmem:[#allocation2 + $0x30] sm:$0xff] (!%p1298_p11)  ;;  %v1081_v4 = vmul.f32 (!%p1298_p11), 2.0, %v1061_v54 }
 0x202   : > { %v1023_v62 = vadd.f32 %v977_v58, %v328_v51  ;;  %v761_v63 = vpop.f32.mrb[6].mxu0  ;;  %v1080_v9 = vmul.f32 (!%p1298_p11), 2.0, %v1060_v36 }
 0x203   : > { %1032 = vst [vmem:[#allocation2 + $0x10] sm:$0xff] %v1012_v60  ;;  %v1022_v18 = vadd.f32 %v972_v61, %v327_v16  ;;  %v927_v31 = vadd.f32 %v2445_v8, %v761_v63  ;;  %v1395_v33 = vpop.f32.mrb[46].mxu1  ;;  %v763_v0 = vpop.f32.mrb[7].mxu0  ;;  %v1063_v45 = vld [vmem:[#allocation2 + $0x48] sm:$0xff] (!%p1298_p11) }
 0x204   : > { %1043 = vst [vmem:[#allocation2 + $0x68] sm:$0xff] %v1023_v62  ;;  %v987_v3 = vadd.f32 %v1395_v33, %v2439_v41  ;;  %v981_v6 = vpop.f32.mrb[47].mxu1  ;;  %v1062_v44 = vld [vmem:[#allocation2 + $0x40] sm:$0xff] (!%p1298_p11)  ;;  %v1083_v60 = vmul.f32 (!%p1298_p11), 2.0, %v1063_v45 }
 0x205   : > { %1042 = vst [vmem:[#allocation2 + $0x60] sm:$0xff] %v1022_v18  ;;  %v1013_v7 = vadd.f32 %v927_v31, %v318_v30  ;;  %v982_v43 = vadd.f32 %v981_v6, %v2437_v37  ;;  %v1082_v20 = vmul.f32 (!%p1298_p11), 2.0, %v1062_v44 }
 0x206   : > { %v1025_v40 = vadd.f32 %v987_v3, %v330_v57 }
 0x207   : > { %1033 = vst [vmem:[#allocation2 + $0x18] sm:$0xff] %v1013_v7  ;;  %v1024_v10 = vadd.f32 %v982_v43, %v329_v29  ;;  %v1398_v28 = vpop.f32.mrb[48].mxu1  ;;  %v1065_v51 = vld [vmem:[#allocation2 + $0x58] sm:$0xff] (!%p1298_p11) }
 0x208   : > { %1045 = vst [vmem:[#allocation2 + $0x78] sm:$0xff] %v1025_v40  ;;  %v997_v8 = vadd.f32 %v1398_v28, %v2443_v52  ;;  %v991_v12 = vpop.f32.mrb[49].mxu1  ;;  %v2474_v52 = vld [vmem:[%s289_s15] ss:$0 sm:$0xff] (!%p1298_p11)  ;;  %v1064_v46 = vld [vmem:[#allocation2 + $0x50] sm:$0xff] (!%p1298_p11)  ;;  %v1085_v18 = vmul.f32 (!%p1298_p11), 2.0, %v1065_v51 }
 0x209   : > { %1044 = vst [vmem:[#allocation2 + $0x70] sm:$0xff] %v1024_v10  ;;  %v992_v14 = vadd.f32 %v991_v12, %v2441_v48  ;;  %v1054_v48 = vld [vmem:[#allocation2] sm:$0xff] (!%p1298_p11)  ;;  %v1105_v2 = vadd.f32 (!%p1298_p11), %v2474_v52, %v1078_v34  ;;  %v1106_v58 = vadd.f32 (!%p1298_p11), %v2474_v52, %v1079_v39  ;;  %v1107_v16 = vadd.f32 (!%p1298_p11), %v2474_v52, %v1080_v9 }
 0x20a   : > { %v1027_v41 = vadd.f32 %v997_v8, %v332_v11  ;;  %v1074_v25 = vmul.f32 (!%p1298_p11), 2.0, %v1054_v48  ;;  %v1056_v26 = vld [vmem:[#allocation2 + $0x10] sm:$0xff] (!%p1298_p11)  ;;  %v1108_v30 = vadd.f32 (!%p1298_p11), %v2474_v52, %v1081_v4  ;;  %v1084_v63 = vmul.f32 (!%p1298_p11), 2.0, %v1064_v46 }
 0x20b   : > { %v1026_v15 = vadd.f32 %v992_v14, %v331_v55  ;;  %v1401_v17 = vpop.f32.mrb[50].mxu1  ;;  %1053 = sbr.rel (%p1298_p11) target bundleno = 542 (0x21e), region = 48  ;;  %v1076_v32 = vmul.f32 (!%p1298_p11), 2.0, %v1056_v26  ;;  %v1067_v53 = vld [vmem:[#allocation2 + $0x68] sm:$0xff] (!%p1298_p11)  ;;  %1125 = vst [vmem:[%s2170_s14 + $0x20] sm:$0xff] (!%p1298_p11), %v1105_v2  ;;  %1126 = vst [vmem:[%s2170_s14 + $0x28] sm:$0xff] (!%p1298_p11), %v1106_v58  ;;  %v1109_v0 = vadd.f32 (!%p1298_p11), %v2474_v52, %v1082_v20  ;;  %v1110_v3 = vadd.f32 (!%p1298_p11), %v2474_v52, %v1083_v60 }
 0x20c   : > { %1047 = vst [vmem:[#allocation2 + $0x88] sm:$0xff] %v1027_v41  ;;  %v1007_v37 = vadd.f32 %v1401_v17, %v2451_v5  ;;  %v1001_v22 = vpop.f32.mrb[51].mxu1  ;;  %v1055_v5 = vld [vmem:[#allocation2 + $0x8] sm:$0xff] (!%p1298_p11)  ;;  %v1101_v56 = vadd.f32 (!%p1298_p11), %v2474_v52, %v1074_v25  ;;  %v1066_v49 = vld [vmem:[#allocation2 + $0x60] sm:$0xff] (!%p1298_p11)  ;;  %1127 = vst [vmem:[%s2170_s14 + $0x30] sm:$0xff] (!%p1298_p11), %v1107_v16  ;;  %v1087_v29 = vmul.f32 (!%p1298_p11), 2.0, %v1067_v53  ;;  %v1111_v40 = vadd.f32 (!%p1298_p11), %v2474_v52, %v1084_v63 }
 0x20d   : > { %1046 = vst [vmem:[#allocation2 + $0x80] sm:$0xff] %v1026_v15  ;;  %v1002_v23 = vadd.f32 %v1001_v22, %v2447_v59  ;;  %v1075_v13 = vmul.f32 (!%p1298_p11), 2.0, %v1055_v5  ;;  %v1103_v1 = vadd.f32 (!%p1298_p11), %v2474_v52, %v1076_v32  ;;  %v1086_v31 = vmul.f32 (!%p1298_p11), 2.0, %v1066_v49  ;;  %1128 = vst [vmem:[%s2170_s14 + $0x38] sm:$0xff] (!%p1298_p11), %v1108_v30 }
 0x20e   : > { %v1029_v24 = vadd.f32 %v1007_v37, %v334_v50  ;;  %v1057_v59 = vld [vmem:[#allocation2 + $0x18] sm:$0xff] (!%p1298_p11)  ;;  %1121 = vst [vmem:[%s2170_s14] sm:$0xff] (!%p1298_p11), %v1101_v56  ;;  %v1112_v10 = vadd.f32 (!%p1298_p11), %v2474_v52, %v1085_v18  ;;  %1129 = vst [vmem:[%s2170_s14 + $0x40] sm:$0xff] (!%p1298_p11), %v1109_v0  ;;  %v1114_v8 = vadd.f32 (!%p1298_p11), %v2474_v52, %v1087_v29 }
 0x20f   : > { %v1028_v42 = vadd.f32 %v1002_v23, %v333_v21  ;;  %v1077_v19 = vmul.f32 (!%p1298_p11), 2.0, %v1057_v59  ;;  %v1102_v38 = vadd.f32 (!%p1298_p11), %v2474_v52, %v1075_v13  ;;  %v1069_v62 = vld [vmem:[#allocation2 + $0x78] sm:$0xff] (!%p1298_p11)  ;;  %1123 = vst [vmem:[%s2170_s14 + $0x10] sm:$0xff] (!%p1298_p11), %v1103_v1  ;;  %v1113_v11 = vadd.f32 (!%p1298_p11), %v2474_v52, %v1086_v31  ;;  %1130 = vst [vmem:[%s2170_s14 + $0x48] sm:$0xff] (!%p1298_p11), %v1110_v3 }
 0x210   : > { %1049 = vst [vmem:[#allocation2 + $0x98] sm:$0xff] %v1029_v24  ;;  %v1068_v61 = vld [vmem:[#allocation2 + $0x70] sm:$0xff] (!%p1298_p11)  ;;  %v1089_v28 = vmul.f32 (!%p1298_p11), 2.0, %v1069_v62  ;;  %1131 = vst [vmem:[%s2170_s14 + $0x50] sm:$0xff] (!%p1298_p11), %v1111_v40 }
 0x211   : > { %1048 = vst [vmem:[#allocation2 + $0x90] sm:$0xff] %v1028_v42  ;;  %v1104_v47 = vadd.f32 (!%p1298_p11), %v2474_v52, %v1077_v19  ;;  %1122 = vst [vmem:[%s2170_s14 + $0x8] sm:$0xff] (!%p1298_p11), %v1102_v38  ;;  %v1088_v6 = vmul.f32 (!%p1298_p11), 2.0, %v1068_v61 }
 0x212   : > { %1132 = vst [vmem:[%s2170_s14 + $0x58] sm:$0xff] %v1112_v10  ;;  %1133 = vst [vmem:[%s2170_s14 + $0x60] sm:$0xff] %v1113_v11  ;;  %v1116_v41 = vadd.f32 %v2474_v52, %v1089_v28 }
 0x213   : > { %1124 = vst [vmem:[%s2170_s14 + $0x18] sm:$0xff] %v1104_v47  ;;  %v1071_v33 = vld [vmem:[#allocation2 + $0x88] sm:$0xff]  ;;  %v1115_v55 = vadd.f32 %v2474_v52, %v1088_v6  ;;  %1134 = vst [vmem:[%s2170_s14 + $0x68] sm:$0xff] %v1114_v8 }
 0x214   : > { %v1070_v57 = vld [vmem:[#allocation2 + $0x80] sm:$0xff]  ;;  %v1091_v14 = vmul.f32 2.0, %v1071_v33  ;;  %1136 = vst [vmem:[%s2170_s14 + $0x78] sm:$0xff] %v1116_v41 }
 0x215   : > { %v1090_v12 = vmul.f32 2.0, %v1070_v57  ;;  %1135 = vst [vmem:[%s2170_s14 + $0x70] sm:$0xff] %v1115_v55 }
 0x216   : > { %v1118_v37 = vadd.f32 %v2474_v52, %v1091_v14 }
 0x217   : > { %v1073_v43 = vld [vmem:[#allocation2 + $0x98] sm:$0xff]  ;;  %v1117_v17 = vadd.f32 %v2474_v52, %v1090_v12 }
 0x218   : > { %v1072_v7 = vld [vmem:[#allocation2 + $0x90] sm:$0xff]  ;;  %v1093_v50 = vmul.f32 2.0, %v1073_v43  ;;  %1138 = vst [vmem:[%s2170_s14 + $0x88] sm:$0xff] %v1118_v37 }
 0x219   : > { %v1092_v15 = vmul.f32 2.0, %v1072_v7  ;;  %1137 = vst [vmem:[%s2170_s14 + $0x80] sm:$0xff] %v1117_v17 }
 0x21a   : > { %v1120_v22 = vadd.f32 %v2474_v52, %v1093_v50 }
 0x21b   : > { %v1119_v21 = vadd.f32 %v2474_v52, %v1092_v15 }
 0x21c   : > { %1140 = vst [vmem:[%s2170_s14 + $0x98] sm:$0xff] %v1120_v22 }
 0x21d   : > { %1139 = vst [vmem:[%s2170_s14 + $0x90] sm:$0xff] %v1119_v21 }
 0x21e PF: > { %s1300_s21 = sshll.u32 %s1870_s22, 7  ;;  %s1157_s7 = sshll.u32 %s2170_s14, 4  ;;  %s2523_s7 = int_to_ptr.vmem [resolvable:$true] %s1157_s7 }
 0x21f   : > { %s2520_s6 = scalar_lea.hbm %s2606_s3, %s1300_s21  ;;  %s2527_s20 = scalar_lea.sflag [#allocation5], %s275_s11 }
 0x220   : > { %s1732_s12 = scalar_lea.vmem %s2523_s7, 2560  ;;  %p2639_p4 = scmp.ne.s32.totalorder %s2633_s9, 0 }
 0x221   : > { %p1733_p1 = scmp.ne.s32.totalorder %s2523_s7, %s1732_s12  ;;  %s1893_s22 = smov [#allocation8]  }
 0x222   : > { %s1736_s26 = sshll.u32 %s1893_s22, 4  ;;  %s1737_s26 = int_to_ptr.vmem [resolvable:$false] %s1736_s26 }
 0x223   : > { %p1734_p8 = pnand %p1733_p1, %p2639_p4  ;;  %s1738_s30 = scalar_lea.vmem %s1737_s26, 5120 }
 0x224   : > { %p1739_p0 = scmp.lt.s32.totalorder %s2523_s7, %s1737_s26  ;;  %p1740_p2 = scmp.lt.s32.totalorder %s1738_s30, %s1732_s12 }
 0x225   : > { %p1735_p13 = pneg %p1734_p8 }
 0x226   : > { %p1741_p9 = por %p1740_p2, %p1739_p0 }
 0x228   : > { %p1742_p12 = pnand %p1741_p9, %p1735_p13 }
 0x22a   : > { %1745 = shalt.err (!%p1742_p12)
}
 0x22b   : > { %s1746_s28 = scalar_lea.hbm %s2520_s6, 2560  ;;  %s1750_s5 = scalar_lea.hbm %s2606_s3, 5120 }
 0x22c   : > { %p1747_p5 = scmp.ne.s32.totalorder %s2520_s6, %s1746_s28  ;;  %p1751_p7 = scmp.lt.u32.totalorder %s2520_s6, %s2606_s3 }
 0x22d   : > { %p1752_p10 = scmp.lt.u32.totalorder %s1750_s5, %s1746_s28  ;;  %p1754_p1 = scmp.lt.u32.totalorder %s1746_s28, %s2520_s6 }
 0x22e   : > { %p1748_p6 = pnand %p1747_p5, %p2639_p4 }
 0x22f   : > { %p1753_p11 = por %p1752_p10, %p1751_p7 }
 0x230   : > { %p1749_p3 = pneg %p1748_p6 }
 0x231   : > { %p1755_p8 = por %p1754_p1, %p1753_p11 }
 0x233   : > { %p1756_p13 = pnand %p1755_p8, %p1749_p3 }
 0x235   : > { %1759 = shalt.err (!%p1756_p13)
}
 0x236   : > { %s1894_s15 = smov 128   ;;  %s1895_s14 = smov 256  }
 0x237   : > { %s1896_s27 = smov 8  }
 0x238   : > { %1547 = dma.vmem_to_hbm [thread:$0]  (%p2639_p4), %s2523_s7, 2560, %s2520_s6, %s2527_s20, %s1894_s15, %s1895_s14, %s1896_s27  }
 0x239 PF: > { %s2640_s10 = sld [smem:[#allocation12_spill]]  ;;  %s2641_s21 = sld [smem:[#allocation20_spill]] }
 0x23a   : > { %p1553_p0 = scmp.ge.s32.totalorder %s1882_s25, 2 }
 0x23f   : > { %s1172_s0 = sand.u32 1, %s2640_s10   ;;  %p2642_p2 = scmp.ne.s32.totalorder %s2641_s21, 0 }
 0x240   : > { %s1173_s29 = scalar_lea.sflag [#allocation5], %s1172_s0 }
 0x241   : > { %p1550_p9 = pnand %p1553_p0, %p2642_p2 }
 0x243   : > { %1825 = dma.done.wait (!%p1550_p9), %s1173_s29, 2560  }
 0x244   : > { %1827 = vsyncadd (!%p1550_p9), %s1173_s29, 4294964736  ;;  %s22_s25 = sadd.s32 1, %s1882_s25   ;;  %s2644_s9 = sld [smem:[#allocation13_spill]] }
 0x245   : > { %p2556_p12 = scmp.ge.s32.totalorder %s22_s25, 6   ;;  %s2645_s14 = sld [smem:[#allocation19_spill]] }
 0x246   : > { %s2646_s6 = sld [smem:[#allocation18_spill]]  ;;  %s2647_s7 = sld [smem:[#allocation14_spill]] }
 0x247   : > { %s2648_s20 = sld [smem:[#allocation17_spill]]  ;;  %s2649_s26 = sld [smem:[#allocation15_spill]] }
 0x248   : > { %s2650_s30 = sld [smem:[#allocation16_spill]]  ;;  %s2652_s12 = smov %s1834_s13 }
 0x249   : > { %s2654_s15 = smov %s1846_s16  ;;  %s2655_s16 = smov %s1850_s17 }
 0x24a   : > { %s2653_s13 = smov %s2644_s9  ;;  %s2657_s18 = smov %s1858_s19 }
 0x24b   : > { %s2659_s21 = smov %s1874_s23  ;;  %s2660_s22 = smov %s1878_s24 }
 0x24c   : > { %s2656_s17 = smov %s2646_s6  ;;  %s2658_s19 = smov %s2647_s7 }
 0x24d   : > { %s2661_s23 = smov %s2649_s26  ;;  %21 = sbr.rel (!%p2556_p12) target bundleno = 14 (0xe), region = 101 }
 0x24e   : > { %s2662_s24 = smov %s2650_s30 }
 0x254   :  { %1178 = vsyncpa [#allocation4], 1 }
 0x255   :  { %1180 = vsyncpa [#allocation4 + $0x1], 1 }
 0x256   :  { %1181 = vsyncpa [#allocation7], 1 }
 0x257   :  { %1183 = vsyncpa [#allocation7 + $0x1], 1 }
 0x258   :  { %1184 = vsyncpa [#allocation5], 1 }
 0x259   :  { %1186 = vsyncpa [#allocation5 + $0x1], 1 }

</bundles_post_ra>
